<compile_context>
chip_gen: v7x
topology: tpu7x:2x2x1
jax: 0.10.0
libtpu: 0.0.40
codegen_flags: <defaults>
</compile_context>

<pallas_src>
import jax
import jax.numpy as jnp
from jax import lax
from jax.experimental import pallas as pl
from jax.experimental.pallas import tpu as pltpu


def bilstm_maxpool_kernel(x_ref, wih_f_ref, wih_b_ref, whh_ref, b_f_ref, b_b_ref,
                          out_ref, gxf_scr, gxb_scr):
    # x_ref:      (T*B, E)    bf16  time-major, flattened, B % 8 == 0
    # wih_*_ref:  (E, 4H)     bf16  gate order [i, f, o, g]
    # whh_ref:    (2H, 8H)    bf16  block-diagonal: [[whh_f, 0], [0, whh_b]]
    # b_*_ref:    (1, 4H)     f32   (b_ih + b_hh) per direction, order [i, f, o, g]
    # out_ref:    (B, 2H)     f32
    # gx*_scr:    (T, B, 4H)  bf16  pre-activations (bwd read in reversed time)
    T, B, H4 = gxf_scr.shape
    H = H4 // 4

    x = x_ref[...]

    # ---- hoisted input projection: dot+bias written straight into bf16 scratch ----
    pf = jnp.dot(x, wih_f_ref[...], preferred_element_type=jnp.float32) + b_f_ref[...]
    gxf_scr[...] = pf.reshape(T, B, H4).astype(jnp.bfloat16)
    pb = jnp.dot(x, wih_b_ref[...], preferred_element_type=jnp.float32) + b_b_ref[...]
    gxb_scr[...] = pb.reshape(T, B, H4).astype(jnp.bfloat16)

    whh = whh_ref[...]                                    # hoisted weight load

    def lstm_cell(g, c):
        # gate order [i, f, o, g]: one sigmoid over 3H, one tanh over H
        s = jax.nn.sigmoid(g[:, :3 * H])
        i_g = s[:, 0 * H:1 * H]
        f_g = s[:, 1 * H:2 * H]
        o_g = s[:, 2 * H:3 * H]
        g_g = jnp.tanh(g[:, 3 * H:])
        c_new = f_g * c + i_g * g_g
        h_new = o_g * jnp.tanh(c_new)
        return h_new, c_new

    def step(t, carry):
        h_cat, cf, cb, mx = carry                          # h_cat (B,2H) bf16
        # single fused MXU push for both directions (block-diagonal whh)
        res = jnp.dot(h_cat, whh, preferred_element_type=jnp.float32)   # (B, 8H)
        gf = gxf_scr[t].astype(jnp.float32) + res[:, :4 * H]
        gb = gxb_scr[T - 1 - t].astype(jnp.float32) + res[:, 4 * H:]
        hf, cf = lstm_cell(gf, cf)
        hb, cb = lstm_cell(gb, cb)
        h_f32 = jnp.concatenate([hf, hb], axis=1)          # (B, 2H)
        mx = jnp.maximum(mx, h_f32)                        # order-independent max-pool
        return h_f32.astype(jnp.bfloat16), cf, cb, mx

    zeros_h = jnp.zeros((B, H), jnp.float32)
    carry0 = (jnp.zeros((B, 2 * H), jnp.bfloat16), zeros_h, zeros_h,
              jnp.full((B, 2 * H), -jnp.inf, jnp.float32))
    _, _, _, mx = lax.fori_loop(0, T, step, carry0, unroll=min(T, 8))

    out_ref[...] = jnp.tanh(mx)


def prepare_params(params):
    """One-time parameter preprocessing (hoisted out of the forward call)."""
    H = params["whh_f"].shape[0]

    def regate(w):   # permute last-dim gate blocks [i, f, g, o] -> [i, f, o, g]
        return jnp.concatenate(
            [w[..., :2 * H], w[..., 3 * H:], w[..., 2 * H:3 * H]], axis=-1)

    whh_bd = jnp.zeros((2 * H, 8 * H), jnp.float32)
    whh_bd = whh_bd.at[:H, :4 * H].set(regate(params["whh_f"]))
    whh_bd = whh_bd.at[H:, 4 * H:].set(regate(params["whh_b"]))

    return dict(
        embedding=params["embedding"].astype(jnp.bfloat16),
        wih_f=regate(params["wih_f"]).astype(jnp.bfloat16),
        wih_b=regate(params["wih_b"]).astype(jnp.bfloat16),
        whh_bd=whh_bd.astype(jnp.bfloat16),
        b_f=regate(params["b_f"]),
        b_b=regate(params["b_b"]),
    )


def seq_encoder_forward(tokens, prep):
    """tokens: (B, T) int32, prep = prepare_params(...) -> (B, 2H) float32 (eval)."""
    B, T = tokens.shape
    E = prep["embedding"].shape[1]
    H = prep["wih_f"].shape[1] // 4

    # Pad batch to a multiple of 8 sublanes -> aligned per-step loads in the kernel.
    B_pad = ((B + 7) // 8) * 8
    if B_pad != B:
        tokens = jnp.pad(tokens, ((0, B_pad - B), (0, 0)))   # pad token = 0 (pad idx)

    # Embedding gather directly in time-major bf16 (no f32 HBM round trip).
    # TODO(synk): fuse the gather into the kernel (PrefetchScalarGridSpec + pl.Element).
    x = jnp.take(prep["embedding"], tokens.T, axis=0).reshape(T * B_pad, E)

    # VMEM footprint estimate -> vmem limit with headroom (<= 40 MiB for v7x).
    scr = 2 * T * B_pad * 4 * H * 2                       # bf16 scratches
    tmp = 2 * T * B_pad * 4 * H * 4                       # f32 GEMM results pre-cast
    wts = 2 * E * 4 * H * 2 + 2 * H * 8 * H * 2 + 2 * 4 * H * 4
    est = T * B_pad * E * 2 + scr + tmp + wts + B_pad * 2 * H * 4 + (1 << 20)
    vmem_limit = int(min(40 * 2**20, max(8 * 2**20, 2 * est)))

    vmem = pl.BlockSpec(memory_space=pltpu.MemorySpace.VMEM)
    out = pl.pallas_call(
        bilstm_maxpool_kernel,
        out_shape=jax.ShapeDtypeStruct((B_pad, 2 * H), jnp.float32),
        in_specs=[vmem] * 6,
        out_specs=vmem,
        scratch_shapes=[pltpu.VMEM((T, B_pad, 4 * H), jnp.bfloat16)] * 2,
        compiler_params=pltpu.CompilerParams(vmem_limit_bytes=vmem_limit),
    )(x, prep["wih_f"], prep["wih_b"], prep["whh_bd"], prep["b_f"], prep["b_b"])
    return out[:B]


def init_params(key, vocab_size, emb_size, hidden_size):
    ks = jax.random.split(key, 12)
    H = hidden_size

    emb = jax.random.normal(ks[0], (vocab_size, emb_size), jnp.float32)
    emb = emb.at[0].set(0.0)  # padding_idx = 0

    def xavier(k, shape):
        fan_in, fan_out = shape
        std = (2.0 / (fan_in + fan_out)) ** 0.5
        return std * jax.random.normal(k, shape, jnp.float32)

    bound = 1.0 / (H ** 0.5)

    def bias(k):
        return jax.random.uniform(k, (4 * H,), jnp.float32, -bound, bound)

    # stored pre-transposed: x @ W_ih^T  ->  x @ wih  with wih shape (E, 4H)
    wih_f = xavier(ks[1], (emb_size, 4 * H))
    whh_f = xavier(ks[2], (H, 4 * H))
    b_f = (bias(ks[3]) + bias(ks[4])).reshape(1, 4 * H)

    wih_b = xavier(ks[5], (emb_size, 4 * H))
    whh_b = xavier(ks[6], (H, 4 * H))
    b_b = (bias(ks[7]) + bias(ks[8])).reshape(1, 4 * H)

    return dict(embedding=emb,
                wih_f=wih_f, whh_f=whh_f, b_f=b_f,
                wih_b=wih_b, whh_b=whh_b, b_b=b_b)


def _reference_forward(tokens, params):
    """Pure-JAX f32 reference (same math as the PyTorch module, eval mode)."""
    emb = params["embedding"][tokens].astype(jnp.float32)   # (B, T, E)
    B, T, E = emb.shape
    H = params["whh_f"].shape[0]

    def run(x_seq, wih, whh, b):
        def step(carry, x_t):
            h, c = carry
            g = x_t @ wih + h @ whh + b
            i_g = jax.nn.sigmoid(g[:, :H])
            f_g = jax.nn.sigmoid(g[:, H:2 * H])
            g_g = jnp.tanh(g[:, 2 * H:3 * H])
            o_g = jax.nn.sigmoid(g[:, 3 * H:])
            c = f_g * c + i_g * g_g
            h = o_g * jnp.tanh(c)
            return (h, c), h
        init = (jnp.zeros((B, H)), jnp.zeros((B, H)))
        _, hs = lax.scan(step, init, x_seq)
        return hs                                             # (T, B, H)

    x_tm = jnp.transpose(emb, (1, 0, 2))
    hs_f = run(x_tm, params["wih_f"], params["whh_f"], params["b_f"])
    hs_b = run(x_tm[::-1], params["wih_b"], params["whh_b"], params["b_b"])[::-1]
    rnn_out = jnp.concatenate([hs_f, hs_b], axis=-1)          # (T, B, 2H)
    pooled = jnp.max(rnn_out, axis=0)                         # (B, 2H)
    return jnp.tanh(pooled)


if __name__ == "__main__":
    # TODO(synk): training-mode dropout not implemented (eval mode => identity).
    vocab_size, emb_size, hidden_size = 50, 32, 32
    batch, seq_len = 2, 8

    key = jax.random.PRNGKey(0)
    k_tok, k_par = jax.random.split(key)
    tokens = jax.random.randint(k_tok, (batch, seq_len), 0, vocab_size, jnp.int32)
    params = init_params(k_par, vocab_size, emb_size, hidden_size)

    prep = prepare_params(params)          # one-time parameter preprocessing
    enc = seq_encoder_forward(tokens, prep)
    enc = jax.block_until_ready(enc)

    ref = _reference_forward(tokens, params)
    assert enc.shape == (batch, 2 * hidden_size)
    assert bool(jnp.all(jnp.isfinite(enc)))
    # bf16 matmul operands + bf16 pre-activation scratch + bf16 h carry
    # (f32 accumulation / gate math) -> looser tolerance vs the f32 reference.
    assert bool(jnp.allclose(enc, ref, atol=5e-2, rtol=5e-2))

    print("KERNEL_OK")
</pallas_src>

<mosaic_0001>
module attributes {stable_mosaic.version = 11 : i64} {
  func.func @bilstm_maxpool_kernel(%arg0: memref<64x32xbf16, #tpu.memory_space<vmem>>, %arg1: memref<32x128xbf16, #tpu.memory_space<vmem>>, %arg2: memref<32x128xbf16, #tpu.memory_space<vmem>>, %arg3: memref<64x256xbf16, #tpu.memory_space<vmem>>, %arg4: memref<1x128xf32, #tpu.memory_space<vmem>>, %arg5: memref<1x128xf32, #tpu.memory_space<vmem>>, %arg6: memref<8x64xf32, #tpu.memory_space<vmem>>, %arg7: memref<8x8x128xbf16, #tpu.memory_space<vmem>>, %arg8: memref<8x8x128xbf16, #tpu.memory_space<vmem>>) attributes {dimension_semantics = [], scalar_prefetch = 0 : i64, scratch_operands = 2 : i64, tpu.core_type = #tpu.core_type<tc>} {
    %c0 = arith.constant 0 : index
    %c0_0 = arith.constant 0 : index
    %0 = vector.load %arg0[%c0, %c0_0] : memref<64x32xbf16, #tpu.memory_space<vmem>>, vector<64x32xbf16>
    %c0_1 = arith.constant 0 : index
    %c0_2 = arith.constant 0 : index
    %1 = vector.load %arg1[%c0_1, %c0_2] : memref<32x128xbf16, #tpu.memory_space<vmem>>, vector<32x128xbf16>
    %cst = arith.constant dense<0.000000e+00> : vector<64x128xf32>
    %2 = tpu.matmul %0, %1, %cst {dimension_numbers = #tpu.dot_dimension_numbers<[1], [0], [0], [1], [0, 0, 1, 1], [], []>} : vector<64x32xbf16>, vector<32x128xbf16>, vector<64x128xf32> -> vector<64x128xf32>
    %c0_3 = arith.constant 0 : index
    %c0_4 = arith.constant 0 : index
    %3 = vector.load %arg4[%c0_3, %c0_4] : memref<1x128xf32, #tpu.memory_space<vmem>>, vector<1x128xf32>
    %4 = vector.broadcast %3 : vector<1x128xf32> to vector<64x128xf32>
    %5 = arith.addf %2, %4 : vector<64x128xf32>
    %6 = vector.shape_cast %5 : vector<64x128xf32> to vector<8x8x128xf32>
    %7 = arith.truncf %6 : vector<8x8x128xf32> to vector<8x8x128xbf16>
    %c0_5 = arith.constant 0 : index
    %c0_6 = arith.constant 0 : index
    %c0_7 = arith.constant 0 : index
    %8 = vector.load %arg7[%c0_5, %c0_6, %c0_7] : memref<8x8x128xbf16, #tpu.memory_space<vmem>>, vector<8x8x128xbf16>
    tpu.vector_store %arg7[%c0_5, %c0_6, %c0_7], %7 {strides = array<i32>} : memref<8x8x128xbf16, #tpu.memory_space<vmem>>, vector<8x8x128xbf16>,
    %c0_8 = arith.constant 0 : index
    %c0_9 = arith.constant 0 : index
    %9 = vector.load %arg2[%c0_8, %c0_9] : memref<32x128xbf16, #tpu.memory_space<vmem>>, vector<32x128xbf16>
    %cst_10 = arith.constant dense<0.000000e+00> : vector<64x128xf32>
    %10 = tpu.matmul %0, %9, %cst_10 {dimension_numbers = #tpu.dot_dimension_numbers<[1], [0], [0], [1], [0, 0, 1, 1], [], []>} : vector<64x32xbf16>, vector<32x128xbf16>, vector<64x128xf32> -> vector<64x128xf32>
    %c0_11 = arith.constant 0 : index
    %c0_12 = arith.constant 0 : index
    %11 = vector.load %arg5[%c0_11, %c0_12] : memref<1x128xf32, #tpu.memory_space<vmem>>, vector<1x128xf32>
    %12 = vector.broadcast %11 : vector<1x128xf32> to vector<64x128xf32>
    %13 = arith.addf %10, %12 : vector<64x128xf32>
    %14 = vector.shape_cast %13 : vector<64x128xf32> to vector<8x8x128xf32>
    %15 = arith.truncf %14 : vector<8x8x128xf32> to vector<8x8x128xbf16>
    %c0_13 = arith.constant 0 : index
    %c0_14 = arith.constant 0 : index
    %c0_15 = arith.constant 0 : index
    %16 = vector.load %arg8[%c0_13, %c0_14, %c0_15] : memref<8x8x128xbf16, #tpu.memory_space<vmem>>, vector<8x8x128xbf16>
    tpu.vector_store %arg8[%c0_13, %c0_14, %c0_15], %15 {strides = array<i32>} : memref<8x8x128xbf16, #tpu.memory_space<vmem>>, vector<8x8x128xbf16>,
    %c0_16 = arith.constant 0 : index
    %c0_17 = arith.constant 0 : index
    %17 = vector.load %arg3[%c0_16, %c0_17] : memref<64x256xbf16, #tpu.memory_space<vmem>>, vector<64x256xbf16>
    %cst_18 = arith.constant 0.000000e+00 : f32
    %18 = vector.broadcast %cst_18 : f32 to vector<8x32xf32>
    %cst_19 = arith.constant 0.000000e+00 : bf16
    %19 = vector.broadcast %cst_19 : bf16 to vector<8x64xbf16>
    %cst_20 = arith.constant 0xFF800000 : f32
    %20 = vector.broadcast %cst_20 : f32 to vector<8x64xf32>
    %c0_i32 = arith.constant 0 : i32
    %cst_21 = arith.constant dense<0.000000e+00> : vector<8x256xf32>
    %21 = tpu.matmul %19, %17, %cst_21 {dimension_numbers = #tpu.dot_dimension_numbers<[1], [0], [0], [1], [0, 0, 1, 1], [], []>} : vector<8x64xbf16>, vector<64x256xbf16>, vector<8x256xf32> -> vector<8x256xf32>
    %22 = arith.index_cast %c0_i32 : i32 to index
    %c0_22 = arith.constant 0 : index
    %c0_23 = arith.constant 0 : index
    %23 = vector.load %arg7[%22, %c0_22, %c0_23] : memref<8x8x128xbf16, #tpu.memory_space<vmem>>, vector<1x8x128xbf16>
    %24 = vector.shape_cast %23 : vector<1x8x128xbf16> to vector<8x128xbf16>
    %25 = arith.extf %24 : vector<8x128xbf16> to vector<8x128xf32>
    %26 = vector.extract_strided_slice %21 {offsets = [0, 0], sizes = [8, 128], strides = [1, 1]} : vector<8x256xf32> to vector<8x128xf32>
    %27 = arith.addf %25, %26 : vector<8x128xf32>
    %c7_i32 = arith.constant 7 : i32
    %28 = arith.subi %c7_i32, %c0_i32 : i32
    %29 = arith.index_cast %28 : i32 to index
    %c0_24 = arith.constant 0 : index
    %c0_25 = arith.constant 0 : index
    %30 = vector.load %arg8[%29, %c0_24, %c0_25] : memref<8x8x128xbf16, #tpu.memory_space<vmem>>, vector<1x8x128xbf16>
    %31 = vector.shape_cast %30 : vector<1x8x128xbf16> to vector<8x128xbf16>
    %32 = arith.extf %31 : vector<8x128xbf16> to vector<8x128xf32>
    %33 = vector.extract_strided_slice %21 {offsets = [0, 128], sizes = [8, 128], strides = [1, 1]} : vector<8x256xf32> to vector<8x128xf32>
    %34 = arith.addf %32, %33 : vector<8x128xf32>
    %35 = vector.extract_strided_slice %27 {offsets = [0, 0], sizes = [8, 96], strides = [1, 1]} : vector<8x128xf32> to vector<8x96xf32>
    %36 = arith.negf %35 : vector<8x96xf32>
    %37 = math.exp %36 : vector<8x96xf32>
    %cst_26 = arith.constant 1.000000e+00 : f32
    %38 = vector.broadcast %cst_26 : f32 to vector<8x96xf32>
    %39 = arith.addf %38, %37 : vector<8x96xf32>
    %40 = arith.divf %38, %39 : vector<8x96xf32>
    %41 = vector.extract_strided_slice %40 {offsets = [0, 0], sizes = [8, 32], strides = [1, 1]} : vector<8x96xf32> to vector<8x32xf32>
    %42 = vector.extract_strided_slice %40 {offsets = [0, 32], sizes = [8, 32], strides = [1, 1]} : vector<8x96xf32> to vector<8x32xf32>
    %43 = vector.extract_strided_slice %40 {offsets = [0, 64], sizes = [8, 32], strides = [1, 1]} : vector<8x96xf32> to vector<8x32xf32>
    %44 = vector.extract_strided_slice %27 {offsets = [0, 96], sizes = [8, 32], strides = [1, 1]} : vector<8x128xf32> to vector<8x32xf32>
    %45 = math.tanh %44 : vector<8x32xf32>
    %46 = arith.mulf %42, %18 : vector<8x32xf32>
    %47 = arith.mulf %41, %45 : vector<8x32xf32>
    %48 = arith.addf %46, %47 : vector<8x32xf32>
    %49 = math.tanh %48 : vector<8x32xf32>
    %50 = arith.mulf %43, %49 : vector<8x32xf32>
    %51 = vector.extract_strided_slice %34 {offsets = [0, 0], sizes = [8, 96], strides = [1, 1]} : vector<8x128xf32> to vector<8x96xf32>
    %52 = arith.negf %51 : vector<8x96xf32>
    %53 = math.exp %52 : vector<8x96xf32>
    %cst_27 = arith.constant 1.000000e+00 : f32
    %54 = vector.broadcast %cst_27 : f32 to vector<8x96xf32>
    %55 = arith.addf %54, %53 : vector<8x96xf32>
    %56 = arith.divf %54, %55 : vector<8x96xf32>
    %57 = vector.extract_strided_slice %56 {offsets = [0, 0], sizes = [8, 32], strides = [1, 1]} : vector<8x96xf32> to vector<8x32xf32>
    %58 = vector.extract_strided_slice %56 {offsets = [0, 32], sizes = [8, 32], strides = [1, 1]} : vector<8x96xf32> to vector<8x32xf32>
    %59 = vector.extract_strided_slice %56 {offsets = [0, 64], sizes = [8, 32], strides = [1, 1]} : vector<8x96xf32> to vector<8x32xf32>
    %60 = vector.extract_strided_slice %34 {offsets = [0, 96], sizes = [8, 32], strides = [1, 1]} : vector<8x128xf32> to vector<8x32xf32>
    %61 = math.tanh %60 : vector<8x32xf32>
    %62 = arith.mulf %58, %18 : vector<8x32xf32>
    %63 = arith.mulf %57, %61 : vector<8x32xf32>
    %64 = arith.addf %62, %63 : vector<8x32xf32>
    %65 = math.tanh %64 : vector<8x32xf32>
    %66 = arith.mulf %59, %65 : vector<8x32xf32>
    %67 = tpu.concatenate %50, %66 in 1 : vector<8x32xf32>, vector<8x32xf32> -> vector<8x64xf32>
    %68 = arith.maximumf %20, %67 : vector<8x64xf32>
    %69 = arith.truncf %67 : vector<8x64xf32> to vector<8x64xbf16>
    %c1_i32 = arith.constant 1 : i32
    %cst_28 = arith.constant dense<0.000000e+00> : vector<8x256xf32>
    %70 = tpu.matmul %69, %17, %cst_28 {dimension_numbers = #tpu.dot_dimension_numbers<[1], [0], [0], [1], [0, 0, 1, 1], [], []>} : vector<8x64xbf16>, vector<64x256xbf16>, vector<8x256xf32> -> vector<8x256xf32>
    %71 = arith.index_cast %c1_i32 : i32 to index
    %c0_29 = arith.constant 0 : index
    %c0_30 = arith.constant 0 : index
    %72 = vector.load %arg7[%71, %c0_29, %c0_30] : memref<8x8x128xbf16, #tpu.memory_space<vmem>>, vector<1x8x128xbf16>
    %73 = vector.shape_cast %72 : vector<1x8x128xbf16> to vector<8x128xbf16>
    %74 = arith.extf %73 : vector<8x128xbf16> to vector<8x128xf32>
    %75 = vector.extract_strided_slice %70 {offsets = [0, 0], sizes = [8, 128], strides = [1, 1]} : vector<8x256xf32> to vector<8x128xf32>
    %76 = arith.addf %74, %75 : vector<8x128xf32>
    %c7_i32_31 = arith.constant 7 : i32
    %77 = arith.subi %c7_i32_31, %c1_i32 : i32
    %78 = arith.index_cast %77 : i32 to index
    %c0_32 = arith.constant 0 : index
    %c0_33 = arith.constant 0 : index
    %79 = vector.load %arg8[%78, %c0_32, %c0_33] : memref<8x8x128xbf16, #tpu.memory_space<vmem>>, vector<1x8x128xbf16>
    %80 = vector.shape_cast %79 : vector<1x8x128xbf16> to vector<8x128xbf16>
    %81 = arith.extf %80 : vector<8x128xbf16> to vector<8x128xf32>
    %82 = vector.extract_strided_slice %70 {offsets = [0, 128], sizes = [8, 128], strides = [1, 1]} : vector<8x256xf32> to vector<8x128xf32>
    %83 = arith.addf %81, %82 : vector<8x128xf32>
    %84 = vector.extract_strided_slice %76 {offsets = [0, 0], sizes = [8, 96], strides = [1, 1]} : vector<8x128xf32> to vector<8x96xf32>
    %85 = arith.negf %84 : vector<8x96xf32>
    %86 = math.exp %85 : vector<8x96xf32>
    %cst_34 = arith.constant 1.000000e+00 : f32
    %87 = vector.broadcast %cst_34 : f32 to vector<8x96xf32>
    %88 = arith.addf %87, %86 : vector<8x96xf32>
    %89 = arith.divf %87, %88 : vector<8x96xf32>
    %90 = vector.extract_strided_slice %89 {offsets = [0, 0], sizes = [8, 32], strides = [1, 1]} : vector<8x96xf32> to vector<8x32xf32>
    %91 = vector.extract_strided_slice %89 {offsets = [0, 32], sizes = [8, 32], strides = [1, 1]} : vector<8x96xf32> to vector<8x32xf32>
    %92 = vector.extract_strided_slice %89 {offsets = [0, 64], sizes = [8, 32], strides = [1, 1]} : vector<8x96xf32> to vector<8x32xf32>
    %93 = vector.extract_strided_slice %76 {offsets = [0, 96], sizes = [8, 32], strides = [1, 1]} : vector<8x128xf32> to vector<8x32xf32>
    %94 = math.tanh %93 : vector<8x32xf32>
    %95 = arith.mulf %91, %48 : vector<8x32xf32>
    %96 = arith.mulf %90, %94 : vector<8x32xf32>
    %97 = arith.addf %95, %96 : vector<8x32xf32>
    %98 = math.tanh %97 : vector<8x32xf32>
    %99 = arith.mulf %92, %98 : vector<8x32xf32>
    %100 = vector.extract_strided_slice %83 {offsets = [0, 0], sizes = [8, 96], strides = [1, 1]} : vector<8x128xf32> to vector<8x96xf32>
    %101 = arith.negf %100 : vector<8x96xf32>
    %102 = math.exp %101 : vector<8x96xf32>
    %cst_35 = arith.constant 1.000000e+00 : f32
    %103 = vector.broadcast %cst_35 : f32 to vector<8x96xf32>
    %104 = arith.addf %103, %102 : vector<8x96xf32>
    %105 = arith.divf %103, %104 : vector<8x96xf32>
    %106 = vector.extract_strided_slice %105 {offsets = [0, 0], sizes = [8, 32], strides = [1, 1]} : vector<8x96xf32> to vector<8x32xf32>
    %107 = vector.extract_strided_slice %105 {offsets = [0, 32], sizes = [8, 32], strides = [1, 1]} : vector<8x96xf32> to vector<8x32xf32>
    %108 = vector.extract_strided_slice %105 {offsets = [0, 64], sizes = [8, 32], strides = [1, 1]} : vector<8x96xf32> to vector<8x32xf32>
    %109 = vector.extract_strided_slice %83 {offsets = [0, 96], sizes = [8, 32], strides = [1, 1]} : vector<8x128xf32> to vector<8x32xf32>
    %110 = math.tanh %109 : vector<8x32xf32>
    %111 = arith.mulf %107, %64 : vector<8x32xf32>
    %112 = arith.mulf %106, %110 : vector<8x32xf32>
    %113 = arith.addf %111, %112 : vector<8x32xf32>
    %114 = math.tanh %113 : vector<8x32xf32>
    %115 = arith.mulf %108, %114 : vector<8x32xf32>
    %116 = tpu.concatenate %99, %115 in 1 : vector<8x32xf32>, vector<8x32xf32> -> vector<8x64xf32>
    %117 = arith.maximumf %68, %116 : vector<8x64xf32>
    %118 = arith.truncf %116 : vector<8x64xf32> to vector<8x64xbf16>
    %c2_i32 = arith.constant 2 : i32
    %cst_36 = arith.constant dense<0.000000e+00> : vector<8x256xf32>
    %119 = tpu.matmul %118, %17, %cst_36 {dimension_numbers = #tpu.dot_dimension_numbers<[1], [0], [0], [1], [0, 0, 1, 1], [], []>} : vector<8x64xbf16>, vector<64x256xbf16>, vector<8x256xf32> -> vector<8x256xf32>
    %120 = arith.index_cast %c2_i32 : i32 to index
    %c0_37 = arith.constant 0 : index
    %c0_38 = arith.constant 0 : index
    %121 = vector.load %arg7[%120, %c0_37, %c0_38] : memref<8x8x128xbf16, #tpu.memory_space<vmem>>, vector<1x8x128xbf16>
    %122 = vector.shape_cast %121 : vector<1x8x128xbf16> to vector<8x128xbf16>
    %123 = arith.extf %122 : vector<8x128xbf16> to vector<8x128xf32>
    %124 = vector.extract_strided_slice %119 {offsets = [0, 0], sizes = [8, 128], strides = [1, 1]} : vector<8x256xf32> to vector<8x128xf32>
    %125 = arith.addf %123, %124 : vector<8x128xf32>
    %c7_i32_39 = arith.constant 7 : i32
    %126 = arith.subi %c7_i32_39, %c2_i32 : i32
    %127 = arith.index_cast %126 : i32 to index
    %c0_40 = arith.constant 0 : index
    %c0_41 = arith.constant 0 : index
    %128 = vector.load %arg8[%127, %c0_40, %c0_41] : memref<8x8x128xbf16, #tpu.memory_space<vmem>>, vector<1x8x128xbf16>
    %129 = vector.shape_cast %128 : vector<1x8x128xbf16> to vector<8x128xbf16>
    %130 = arith.extf %129 : vector<8x128xbf16> to vector<8x128xf32>
    %131 = vector.extract_strided_slice %119 {offsets = [0, 128], sizes = [8, 128], strides = [1, 1]} : vector<8x256xf32> to vector<8x128xf32>
    %132 = arith.addf %130, %131 : vector<8x128xf32>
    %133 = vector.extract_strided_slice %125 {offsets = [0, 0], sizes = [8, 96], strides = [1, 1]} : vector<8x128xf32> to vector<8x96xf32>
    %134 = arith.negf %133 : vector<8x96xf32>
    %135 = math.exp %134 : vector<8x96xf32>
    %cst_42 = arith.constant 1.000000e+00 : f32
    %136 = vector.broadcast %cst_42 : f32 to vector<8x96xf32>
    %137 = arith.addf %136, %135 : vector<8x96xf32>
    %138 = arith.divf %136, %137 : vector<8x96xf32>
    %139 = vector.extract_strided_slice %138 {offsets = [0, 0], sizes = [8, 32], strides = [1, 1]} : vector<8x96xf32> to vector<8x32xf32>
    %140 = vector.extract_strided_slice %138 {offsets = [0, 32], sizes = [8, 32], strides = [1, 1]} : vector<8x96xf32> to vector<8x32xf32>
    %141 = vector.extract_strided_slice %138 {offsets = [0, 64], sizes = [8, 32], strides = [1, 1]} : vector<8x96xf32> to vector<8x32xf32>
    %142 = vector.extract_strided_slice %125 {offsets = [0, 96], sizes = [8, 32], strides = [1, 1]} : vector<8x128xf32> to vector<8x32xf32>
    %143 = math.tanh %142 : vector<8x32xf32>
    %144 = arith.mulf %140, %97 : vector<8x32xf32>
    %145 = arith.mulf %139, %143 : vector<8x32xf32>
    %146 = arith.addf %144, %145 : vector<8x32xf32>
    %147 = math.tanh %146 : vector<8x32xf32>
    %148 = arith.mulf %141, %147 : vector<8x32xf32>
    %149 = vector.extract_strided_slice %132 {offsets = [0, 0], sizes = [8, 96], strides = [1, 1]} : vector<8x128xf32> to vector<8x96xf32>
    %150 = arith.negf %149 : vector<8x96xf32>
    %151 = math.exp %150 : vector<8x96xf32>
    %cst_43 = arith.constant 1.000000e+00 : f32
    %152 = vector.broadcast %cst_43 : f32 to vector<8x96xf32>
    %153 = arith.addf %152, %151 : vector<8x96xf32>
    %154 = arith.divf %152, %153 : vector<8x96xf32>
    %155 = vector.extract_strided_slice %154 {offsets = [0, 0], sizes = [8, 32], strides = [1, 1]} : vector<8x96xf32> to vector<8x32xf32>
    %156 = vector.extract_strided_slice %154 {offsets = [0, 32], sizes = [8, 32], strides = [1, 1]} : vector<8x96xf32> to vector<8x32xf32>
    %157 = vector.extract_strided_slice %154 {offsets = [0, 64], sizes = [8, 32], strides = [1, 1]} : vector<8x96xf32> to vector<8x32xf32>
    %158 = vector.extract_strided_slice %132 {offsets = [0, 96], sizes = [8, 32], strides = [1, 1]} : vector<8x128xf32> to vector<8x32xf32>
    %159 = math.tanh %158 : vector<8x32xf32>
    %160 = arith.mulf %156, %113 : vector<8x32xf32>
    %161 = arith.mulf %155, %159 : vector<8x32xf32>
    %162 = arith.addf %160, %161 : vector<8x32xf32>
    %163 = math.tanh %162 : vector<8x32xf32>
    %164 = arith.mulf %157, %163 : vector<8x32xf32>
    %165 = tpu.concatenate %148, %164 in 1 : vector<8x32xf32>, vector<8x32xf32> -> vector<8x64xf32>
    %166 = arith.maximumf %117, %165 : vector<8x64xf32>
    %167 = arith.truncf %165 : vector<8x64xf32> to vector<8x64xbf16>
    %c3_i32 = arith.constant 3 : i32
    %cst_44 = arith.constant dense<0.000000e+00> : vector<8x256xf32>
    %168 = tpu.matmul %167, %17, %cst_44 {dimension_numbers = #tpu.dot_dimension_numbers<[1], [0], [0], [1], [0, 0, 1, 1], [], []>} : vector<8x64xbf16>, vector<64x256xbf16>, vector<8x256xf32> -> vector<8x256xf32>
    %169 = arith.index_cast %c3_i32 : i32 to index
    %c0_45 = arith.constant 0 : index
    %c0_46 = arith.constant 0 : index
    %170 = vector.load %arg7[%169, %c0_45, %c0_46] : memref<8x8x128xbf16, #tpu.memory_space<vmem>>, vector<1x8x128xbf16>
    %171 = vector.shape_cast %170 : vector<1x8x128xbf16> to vector<8x128xbf16>
    %172 = arith.extf %171 : vector<8x128xbf16> to vector<8x128xf32>
    %173 = vector.extract_strided_slice %168 {offsets = [0, 0], sizes = [8, 128], strides = [1, 1]} : vector<8x256xf32> to vector<8x128xf32>
    %174 = arith.addf %172, %173 : vector<8x128xf32>
    %c7_i32_47 = arith.constant 7 : i32
    %175 = arith.subi %c7_i32_47, %c3_i32 : i32
    %176 = arith.index_cast %175 : i32 to index
    %c0_48 = arith.constant 0 : index
    %c0_49 = arith.constant 0 : index
    %177 = vector.load %arg8[%176, %c0_48, %c0_49] : memref<8x8x128xbf16, #tpu.memory_space<vmem>>, vector<1x8x128xbf16>
    %178 = vector.shape_cast %177 : vector<1x8x128xbf16> to vector<8x128xbf16>
    %179 = arith.extf %178 : vector<8x128xbf16> to vector<8x128xf32>
    %180 = vector.extract_strided_slice %168 {offsets = [0, 128], sizes = [8, 128], strides = [1, 1]} : vector<8x256xf32> to vector<8x128xf32>
    %181 = arith.addf %179, %180 : vector<8x128xf32>
    %182 = vector.extract_strided_slice %174 {offsets = [0, 0], sizes = [8, 96], strides = [1, 1]} : vector<8x128xf32> to vector<8x96xf32>
    %183 = arith.negf %182 : vector<8x96xf32>
    %184 = math.exp %183 : vector<8x96xf32>
    %cst_50 = arith.constant 1.000000e+00 : f32
    %185 = vector.broadcast %cst_50 : f32 to vector<8x96xf32>
    %186 = arith.addf %185, %184 : vector<8x96xf32>
    %187 = arith.divf %185, %186 : vector<8x96xf32>
    %188 = vector.extract_strided_slice %187 {offsets = [0, 0], sizes = [8, 32], strides = [1, 1]} : vector<8x96xf32> to vector<8x32xf32>
    %189 = vector.extract_strided_slice %187 {offsets = [0, 32], sizes = [8, 32], strides = [1, 1]} : vector<8x96xf32> to vector<8x32xf32>
    %190 = vector.extract_strided_slice %187 {offsets = [0, 64], sizes = [8, 32], strides = [1, 1]} : vector<8x96xf32> to vector<8x32xf32>
    %191 = vector.extract_strided_slice %174 {offsets = [0, 96], sizes = [8, 32], strides = [1, 1]} : vector<8x128xf32> to vector<8x32xf32>
    %192 = math.tanh %191 : vector<8x32xf32>
    %193 = arith.mulf %189, %146 : vector<8x32xf32>
    %194 = arith.mulf %188, %192 : vector<8x32xf32>
    %195 = arith.addf %193, %194 : vector<8x32xf32>
    %196 = math.tanh %195 : vector<8x32xf32>
    %197 = arith.mulf %190, %196 : vector<8x32xf32>
    %198 = vector.extract_strided_slice %181 {offsets = [0, 0], sizes = [8, 96], strides = [1, 1]} : vector<8x128xf32> to vector<8x96xf32>
    %199 = arith.negf %198 : vector<8x96xf32>
    %200 = math.exp %199 : vector<8x96xf32>
    %cst_51 = arith.constant 1.000000e+00 : f32
    %201 = vector.broadcast %cst_51 : f32 to vector<8x96xf32>
    %202 = arith.addf %201, %200 : vector<8x96xf32>
    %203 = arith.divf %201, %202 : vector<8x96xf32>
    %204 = vector.extract_strided_slice %203 {offsets = [0, 0], sizes = [8, 32], strides = [1, 1]} : vector<8x96xf32> to vector<8x32xf32>
    %205 = vector.extract_strided_slice %203 {offsets = [0, 32], sizes = [8, 32], strides = [1, 1]} : vector<8x96xf32> to vector<8x32xf32>
    %206 = vector.extract_strided_slice %203 {offsets = [0, 64], sizes = [8, 32], strides = [1, 1]} : vector<8x96xf32> to vector<8x32xf32>
    %207 = vector.extract_strided_slice %181 {offsets = [0, 96], sizes = [8, 32], strides = [1, 1]} : vector<8x128xf32> to vector<8x32xf32>
    %208 = math.tanh %207 : vector<8x32xf32>
    %209 = arith.mulf %205, %162 : vector<8x32xf32>
    %210 = arith.mulf %204, %208 : vector<8x32xf32>
    %211 = arith.addf %209, %210 : vector<8x32xf32>
    %212 = math.tanh %211 : vector<8x32xf32>
    %213 = arith.mulf %206, %212 : vector<8x32xf32>
    %214 = tpu.concatenate %197, %213 in 1 : vector<8x32xf32>, vector<8x32xf32> -> vector<8x64xf32>
    %215 = arith.maximumf %166, %214 : vector<8x64xf32>
    %216 = arith.truncf %214 : vector<8x64xf32> to vector<8x64xbf16>
    %c4_i32 = arith.constant 4 : i32
    %cst_52 = arith.constant dense<0.000000e+00> : vector<8x256xf32>
    %217 = tpu.matmul %216, %17, %cst_52 {dimension_numbers = #tpu.dot_dimension_numbers<[1], [0], [0], [1], [0, 0, 1, 1], [], []>} : vector<8x64xbf16>, vector<64x256xbf16>, vector<8x256xf32> -> vector<8x256xf32>
    %218 = arith.index_cast %c4_i32 : i32 to index
    %c0_53 = arith.constant 0 : index
    %c0_54 = arith.constant 0 : index
    %219 = vector.load %arg7[%218, %c0_53, %c0_54] : memref<8x8x128xbf16, #tpu.memory_space<vmem>>, vector<1x8x128xbf16>
    %220 = vector.shape_cast %219 : vector<1x8x128xbf16> to vector<8x128xbf16>
    %221 = arith.extf %220 : vector<8x128xbf16> to vector<8x128xf32>
    %222 = vector.extract_strided_slice %217 {offsets = [0, 0], sizes = [8, 128], strides = [1, 1]} : vector<8x256xf32> to vector<8x128xf32>
    %223 = arith.addf %221, %222 : vector<8x128xf32>
    %c7_i32_55 = arith.constant 7 : i32
    %224 = arith.subi %c7_i32_55, %c4_i32 : i32
    %225 = arith.index_cast %224 : i32 to index
    %c0_56 = arith.constant 0 : index
    %c0_57 = arith.constant 0 : index
    %226 = vector.load %arg8[%225, %c0_56, %c0_57] : memref<8x8x128xbf16, #tpu.memory_space<vmem>>, vector<1x8x128xbf16>
    %227 = vector.shape_cast %226 : vector<1x8x128xbf16> to vector<8x128xbf16>
    %228 = arith.extf %227 : vector<8x128xbf16> to vector<8x128xf32>
    %229 = vector.extract_strided_slice %217 {offsets = [0, 128], sizes = [8, 128], strides = [1, 1]} : vector<8x256xf32> to vector<8x128xf32>
    %230 = arith.addf %228, %229 : vector<8x128xf32>
    %231 = vector.extract_strided_slice %223 {offsets = [0, 0], sizes = [8, 96], strides = [1, 1]} : vector<8x128xf32> to vector<8x96xf32>
    %232 = arith.negf %231 : vector<8x96xf32>
    %233 = math.exp %232 : vector<8x96xf32>
    %cst_58 = arith.constant 1.000000e+00 : f32
    %234 = vector.broadcast %cst_58 : f32 to vector<8x96xf32>
    %235 = arith.addf %234, %233 : vector<8x96xf32>
    %236 = arith.divf %234, %235 : vector<8x96xf32>
    %237 = vector.extract_strided_slice %236 {offsets = [0, 0], sizes = [8, 32], strides = [1, 1]} : vector<8x96xf32> to vector<8x32xf32>
    %238 = vector.extract_strided_slice %236 {offsets = [0, 32], sizes = [8, 32], strides = [1, 1]} : vector<8x96xf32> to vector<8x32xf32>
    %239 = vector.extract_strided_slice %236 {offsets = [0, 64], sizes = [8, 32], strides = [1, 1]} : vector<8x96xf32> to vector<8x32xf32>
    %240 = vector.extract_strided_slice %223 {offsets = [0, 96], sizes = [8, 32], strides = [1, 1]} : vector<8x128xf32> to vector<8x32xf32>
    %241 = math.tanh %240 : vector<8x32xf32>
    %242 = arith.mulf %238, %195 : vector<8x32xf32>
    %243 = arith.mulf %237, %241 : vector<8x32xf32>
    %244 = arith.addf %242, %243 : vector<8x32xf32>
    %245 = math.tanh %244 : vector<8x32xf32>
    %246 = arith.mulf %239, %245 : vector<8x32xf32>
    %247 = vector.extract_strided_slice %230 {offsets = [0, 0], sizes = [8, 96], strides = [1, 1]} : vector<8x128xf32> to vector<8x96xf32>
    %248 = arith.negf %247 : vector<8x96xf32>
    %249 = math.exp %248 : vector<8x96xf32>
    %cst_59 = arith.constant 1.000000e+00 : f32
    %250 = vector.broadcast %cst_59 : f32 to vector<8x96xf32>
    %251 = arith.addf %250, %249 : vector<8x96xf32>
    %252 = arith.divf %250, %251 : vector<8x96xf32>
    %253 = vector.extract_strided_slice %252 {offsets = [0, 0], sizes = [8, 32], strides = [1, 1]} : vector<8x96xf32> to vector<8x32xf32>
    %254 = vector.extract_strided_slice %252 {offsets = [0, 32], sizes = [8, 32], strides = [1, 1]} : vector<8x96xf32> to vector<8x32xf32>
    %255 = vector.extract_strided_slice %252 {offsets = [0, 64], sizes = [8, 32], strides = [1, 1]} : vector<8x96xf32> to vector<8x32xf32>
    %256 = vector.extract_strided_slice %230 {offsets = [0, 96], sizes = [8, 32], strides = [1, 1]} : vector<8x128xf32> to vector<8x32xf32>
    %257 = math.tanh %256 : vector<8x32xf32>
    %258 = arith.mulf %254, %211 : vector<8x32xf32>
    %259 = arith.mulf %253, %257 : vector<8x32xf32>
    %260 = arith.addf %258, %259 : vector<8x32xf32>
    %261 = math.tanh %260 : vector<8x32xf32>
    %262 = arith.mulf %255, %261 : vector<8x32xf32>
    %263 = tpu.concatenate %246, %262 in 1 : vector<8x32xf32>, vector<8x32xf32> -> vector<8x64xf32>
    %264 = arith.maximumf %215, %263 : vector<8x64xf32>
    %265 = arith.truncf %263 : vector<8x64xf32> to vector<8x64xbf16>
    %c5_i32 = arith.constant 5 : i32
    %cst_60 = arith.constant dense<0.000000e+00> : vector<8x256xf32>
    %266 = tpu.matmul %265, %17, %cst_60 {dimension_numbers = #tpu.dot_dimension_numbers<[1], [0], [0], [1], [0, 0, 1, 1], [], []>} : vector<8x64xbf16>, vector<64x256xbf16>, vector<8x256xf32> -> vector<8x256xf32>
    %267 = arith.index_cast %c5_i32 : i32 to index
    %c0_61 = arith.constant 0 : index
    %c0_62 = arith.constant 0 : index
    %268 = vector.load %arg7[%267, %c0_61, %c0_62] : memref<8x8x128xbf16, #tpu.memory_space<vmem>>, vector<1x8x128xbf16>
    %269 = vector.shape_cast %268 : vector<1x8x128xbf16> to vector<8x128xbf16>
    %270 = arith.extf %269 : vector<8x128xbf16> to vector<8x128xf32>
    %271 = vector.extract_strided_slice %266 {offsets = [0, 0], sizes = [8, 128], strides = [1, 1]} : vector<8x256xf32> to vector<8x128xf32>
    %272 = arith.addf %270, %271 : vector<8x128xf32>
    %c7_i32_63 = arith.constant 7 : i32
    %273 = arith.subi %c7_i32_63, %c5_i32 : i32
    %274 = arith.index_cast %273 : i32 to index
    %c0_64 = arith.constant 0 : index
    %c0_65 = arith.constant 0 : index
    %275 = vector.load %arg8[%274, %c0_64, %c0_65] : memref<8x8x128xbf16, #tpu.memory_space<vmem>>, vector<1x8x128xbf16>
    %276 = vector.shape_cast %275 : vector<1x8x128xbf16> to vector<8x128xbf16>
    %277 = arith.extf %276 : vector<8x128xbf16> to vector<8x128xf32>
    %278 = vector.extract_strided_slice %266 {offsets = [0, 128], sizes = [8, 128], strides = [1, 1]} : vector<8x256xf32> to vector<8x128xf32>
    %279 = arith.addf %277, %278 : vector<8x128xf32>
    %280 = vector.extract_strided_slice %272 {offsets = [0, 0], sizes = [8, 96], strides = [1, 1]} : vector<8x128xf32> to vector<8x96xf32>
    %281 = arith.negf %280 : vector<8x96xf32>
    %282 = math.exp %281 : vector<8x96xf32>
    %cst_66 = arith.constant 1.000000e+00 : f32
    %283 = vector.broadcast %cst_66 : f32 to vector<8x96xf32>
    %284 = arith.addf %283, %282 : vector<8x96xf32>
    %285 = arith.divf %283, %284 : vector<8x96xf32>
    %286 = vector.extract_strided_slice %285 {offsets = [0, 0], sizes = [8, 32], strides = [1, 1]} : vector<8x96xf32> to vector<8x32xf32>
    %287 = vector.extract_strided_slice %285 {offsets = [0, 32], sizes = [8, 32], strides = [1, 1]} : vector<8x96xf32> to vector<8x32xf32>
    %288 = vector.extract_strided_slice %285 {offsets = [0, 64], sizes = [8, 32], strides = [1, 1]} : vector<8x96xf32> to vector<8x32xf32>
    %289 = vector.extract_strided_slice %272 {offsets = [0, 96], sizes = [8, 32], strides = [1, 1]} : vector<8x128xf32> to vector<8x32xf32>
    %290 = math.tanh %289 : vector<8x32xf32>
    %291 = arith.mulf %287, %244 : vector<8x32xf32>
    %292 = arith.mulf %286, %290 : vector<8x32xf32>
    %293 = arith.addf %291, %292 : vector<8x32xf32>
    %294 = math.tanh %293 : vector<8x32xf32>
    %295 = arith.mulf %288, %294 : vector<8x32xf32>
    %296 = vector.extract_strided_slice %279 {offsets = [0, 0], sizes = [8, 96], strides = [1, 1]} : vector<8x128xf32> to vector<8x96xf32>
    %297 = arith.negf %296 : vector<8x96xf32>
    %298 = math.exp %297 : vector<8x96xf32>
    %cst_67 = arith.constant 1.000000e+00 : f32
    %299 = vector.broadcast %cst_67 : f32 to vector<8x96xf32>
    %300 = arith.addf %299, %298 : vector<8x96xf32>
    %301 = arith.divf %299, %300 : vector<8x96xf32>
    %302 = vector.extract_strided_slice %301 {offsets = [0, 0], sizes = [8, 32], strides = [1, 1]} : vector<8x96xf32> to vector<8x32xf32>
    %303 = vector.extract_strided_slice %301 {offsets = [0, 32], sizes = [8, 32], strides = [1, 1]} : vector<8x96xf32> to vector<8x32xf32>
    %304 = vector.extract_strided_slice %301 {offsets = [0, 64], sizes = [8, 32], strides = [1, 1]} : vector<8x96xf32> to vector<8x32xf32>
    %305 = vector.extract_strided_slice %279 {offsets = [0, 96], sizes = [8, 32], strides = [1, 1]} : vector<8x128xf32> to vector<8x32xf32>
    %306 = math.tanh %305 : vector<8x32xf32>
    %307 = arith.mulf %303, %260 : vector<8x32xf32>
    %308 = arith.mulf %302, %306 : vector<8x32xf32>
    %309 = arith.addf %307, %308 : vector<8x32xf32>
    %310 = math.tanh %309 : vector<8x32xf32>
    %311 = arith.mulf %304, %310 : vector<8x32xf32>
    %312 = tpu.concatenate %295, %311 in 1 : vector<8x32xf32>, vector<8x32xf32> -> vector<8x64xf32>
    %313 = arith.maximumf %264, %312 : vector<8x64xf32>
    %314 = arith.truncf %312 : vector<8x64xf32> to vector<8x64xbf16>
    %c6_i32 = arith.constant 6 : i32
    %cst_68 = arith.constant dense<0.000000e+00> : vector<8x256xf32>
    %315 = tpu.matmul %314, %17, %cst_68 {dimension_numbers = #tpu.dot_dimension_numbers<[1], [0], [0], [1], [0, 0, 1, 1], [], []>} : vector<8x64xbf16>, vector<64x256xbf16>, vector<8x256xf32> -> vector<8x256xf32>
    %316 = arith.index_cast %c6_i32 : i32 to index
    %c0_69 = arith.constant 0 : index
    %c0_70 = arith.constant 0 : index
    %317 = vector.load %arg7[%316, %c0_69, %c0_70] : memref<8x8x128xbf16, #tpu.memory_space<vmem>>, vector<1x8x128xbf16>
    %318 = vector.shape_cast %317 : vector<1x8x128xbf16> to vector<8x128xbf16>
    %319 = arith.extf %318 : vector<8x128xbf16> to vector<8x128xf32>
    %320 = vector.extract_strided_slice %315 {offsets = [0, 0], sizes = [8, 128], strides = [1, 1]} : vector<8x256xf32> to vector<8x128xf32>
    %321 = arith.addf %319, %320 : vector<8x128xf32>
    %c7_i32_71 = arith.constant 7 : i32
    %322 = arith.subi %c7_i32_71, %c6_i32 : i32
    %323 = arith.index_cast %322 : i32 to index
    %c0_72 = arith.constant 0 : index
    %c0_73 = arith.constant 0 : index
    %324 = vector.load %arg8[%323, %c0_72, %c0_73] : memref<8x8x128xbf16, #tpu.memory_space<vmem>>, vector<1x8x128xbf16>
    %325 = vector.shape_cast %324 : vector<1x8x128xbf16> to vector<8x128xbf16>
    %326 = arith.extf %325 : vector<8x128xbf16> to vector<8x128xf32>
    %327 = vector.extract_strided_slice %315 {offsets = [0, 128], sizes = [8, 128], strides = [1, 1]} : vector<8x256xf32> to vector<8x128xf32>
    %328 = arith.addf %326, %327 : vector<8x128xf32>
    %329 = vector.extract_strided_slice %321 {offsets = [0, 0], sizes = [8, 96], strides = [1, 1]} : vector<8x128xf32> to vector<8x96xf32>
    %330 = arith.negf %329 : vector<8x96xf32>
    %331 = math.exp %330 : vector<8x96xf32>
    %cst_74 = arith.constant 1.000000e+00 : f32
    %332 = vector.broadcast %cst_74 : f32 to vector<8x96xf32>
    %333 = arith.addf %332, %331 : vector<8x96xf32>
    %334 = arith.divf %332, %333 : vector<8x96xf32>
    %335 = vector.extract_strided_slice %334 {offsets = [0, 0], sizes = [8, 32], strides = [1, 1]} : vector<8x96xf32> to vector<8x32xf32>
    %336 = vector.extract_strided_slice %334 {offsets = [0, 32], sizes = [8, 32], strides = [1, 1]} : vector<8x96xf32> to vector<8x32xf32>
    %337 = vector.extract_strided_slice %334 {offsets = [0, 64], sizes = [8, 32], strides = [1, 1]} : vector<8x96xf32> to vector<8x32xf32>
    %338 = vector.extract_strided_slice %321 {offsets = [0, 96], sizes = [8, 32], strides = [1, 1]} : vector<8x128xf32> to vector<8x32xf32>
    %339 = math.tanh %338 : vector<8x32xf32>
    %340 = arith.mulf %336, %293 : vector<8x32xf32>
    %341 = arith.mulf %335, %339 : vector<8x32xf32>
    %342 = arith.addf %340, %341 : vector<8x32xf32>
    %343 = math.tanh %342 : vector<8x32xf32>
    %344 = arith.mulf %337, %343 : vector<8x32xf32>
    %345 = vector.extract_strided_slice %328 {offsets = [0, 0], sizes = [8, 96], strides = [1, 1]} : vector<8x128xf32> to vector<8x96xf32>
    %346 = arith.negf %345 : vector<8x96xf32>
    %347 = math.exp %346 : vector<8x96xf32>
    %cst_75 = arith.constant 1.000000e+00 : f32
    %348 = vector.broadcast %cst_75 : f32 to vector<8x96xf32>
    %349 = arith.addf %348, %347 : vector<8x96xf32>
    %350 = arith.divf %348, %349 : vector<8x96xf32>
    %351 = vector.extract_strided_slice %350 {offsets = [0, 0], sizes = [8, 32], strides = [1, 1]} : vector<8x96xf32> to vector<8x32xf32>
    %352 = vector.extract_strided_slice %350 {offsets = [0, 32], sizes = [8, 32], strides = [1, 1]} : vector<8x96xf32> to vector<8x32xf32>
    %353 = vector.extract_strided_slice %350 {offsets = [0, 64], sizes = [8, 32], strides = [1, 1]} : vector<8x96xf32> to vector<8x32xf32>
    %354 = vector.extract_strided_slice %328 {offsets = [0, 96], sizes = [8, 32], strides = [1, 1]} : vector<8x128xf32> to vector<8x32xf32>
    %355 = math.tanh %354 : vector<8x32xf32>
    %356 = arith.mulf %352, %309 : vector<8x32xf32>
    %357 = arith.mulf %351, %355 : vector<8x32xf32>
    %358 = arith.addf %356, %357 : vector<8x32xf32>
    %359 = math.tanh %358 : vector<8x32xf32>
    %360 = arith.mulf %353, %359 : vector<8x32xf32>
    %361 = tpu.concatenate %344, %360 in 1 : vector<8x32xf32>, vector<8x32xf32> -> vector<8x64xf32>
    %362 = arith.maximumf %313, %361 : vector<8x64xf32>
    %363 = arith.truncf %361 : vector<8x64xf32> to vector<8x64xbf16>
    %c7_i32_76 = arith.constant 7 : i32
    %cst_77 = arith.constant dense<0.000000e+00> : vector<8x256xf32>
    %364 = tpu.matmul %363, %17, %cst_77 {dimension_numbers = #tpu.dot_dimension_numbers<[1], [0], [0], [1], [0, 0, 1, 1], [], []>} : vector<8x64xbf16>, vector<64x256xbf16>, vector<8x256xf32> -> vector<8x256xf32>
    %365 = arith.index_cast %c7_i32_76 : i32 to index
    %c0_78 = arith.constant 0 : index
    %c0_79 = arith.constant 0 : index
    %366 = vector.load %arg7[%365, %c0_78, %c0_79] : memref<8x8x128xbf16, #tpu.memory_space<vmem>>, vector<1x8x128xbf16>
    %367 = vector.shape_cast %366 : vector<1x8x128xbf16> to vector<8x128xbf16>
    %368 = arith.extf %367 : vector<8x128xbf16> to vector<8x128xf32>
    %369 = vector.extract_strided_slice %364 {offsets = [0, 0], sizes = [8, 128], strides = [1, 1]} : vector<8x256xf32> to vector<8x128xf32>
    %370 = arith.addf %368, %369 : vector<8x128xf32>
    %c7_i32_80 = arith.constant 7 : i32
    %371 = arith.subi %c7_i32_80, %c7_i32_76 : i32
    %372 = arith.index_cast %371 : i32 to index
    %c0_81 = arith.constant 0 : index
    %c0_82 = arith.constant 0 : index
    %373 = vector.load %arg8[%372, %c0_81, %c0_82] : memref<8x8x128xbf16, #tpu.memory_space<vmem>>, vector<1x8x128xbf16>
    %374 = vector.shape_cast %373 : vector<1x8x128xbf16> to vector<8x128xbf16>
    %375 = arith.extf %374 : vector<8x128xbf16> to vector<8x128xf32>
    %376 = vector.extract_strided_slice %364 {offsets = [0, 128], sizes = [8, 128], strides = [1, 1]} : vector<8x256xf32> to vector<8x128xf32>
    %377 = arith.addf %375, %376 : vector<8x128xf32>
    %378 = vector.extract_strided_slice %370 {offsets = [0, 0], sizes = [8, 96], strides = [1, 1]} : vector<8x128xf32> to vector<8x96xf32>
    %379 = arith.negf %378 : vector<8x96xf32>
    %380 = math.exp %379 : vector<8x96xf32>
    %cst_83 = arith.constant 1.000000e+00 : f32
    %381 = vector.broadcast %cst_83 : f32 to vector<8x96xf32>
    %382 = arith.addf %381, %380 : vector<8x96xf32>
    %383 = arith.divf %381, %382 : vector<8x96xf32>
    %384 = vector.extract_strided_slice %383 {offsets = [0, 0], sizes = [8, 32], strides = [1, 1]} : vector<8x96xf32> to vector<8x32xf32>
    %385 = vector.extract_strided_slice %383 {offsets = [0, 32], sizes = [8, 32], strides = [1, 1]} : vector<8x96xf32> to vector<8x32xf32>
    %386 = vector.extract_strided_slice %383 {offsets = [0, 64], sizes = [8, 32], strides = [1, 1]} : vector<8x96xf32> to vector<8x32xf32>
    %387 = vector.extract_strided_slice %370 {offsets = [0, 96], sizes = [8, 32], strides = [1, 1]} : vector<8x128xf32> to vector<8x32xf32>
    %388 = math.tanh %387 : vector<8x32xf32>
    %389 = arith.mulf %385, %342 : vector<8x32xf32>
    %390 = arith.mulf %384, %388 : vector<8x32xf32>
    %391 = arith.addf %389, %390 : vector<8x32xf32>
    %392 = math.tanh %391 : vector<8x32xf32>
    %393 = arith.mulf %386, %392 : vector<8x32xf32>
    %394 = vector.extract_strided_slice %377 {offsets = [0, 0], sizes = [8, 96], strides = [1, 1]} : vector<8x128xf32> to vector<8x96xf32>
    %395 = arith.negf %394 : vector<8x96xf32>
    %396 = math.exp %395 : vector<8x96xf32>
    %cst_84 = arith.constant 1.000000e+00 : f32
    %397 = vector.broadcast %cst_84 : f32 to vector<8x96xf32>
    %398 = arith.addf %397, %396 : vector<8x96xf32>
    %399 = arith.divf %397, %398 : vector<8x96xf32>
    %400 = vector.extract_strided_slice %399 {offsets = [0, 0], sizes = [8, 32], strides = [1, 1]} : vector<8x96xf32> to vector<8x32xf32>
    %401 = vector.extract_strided_slice %399 {offsets = [0, 32], sizes = [8, 32], strides = [1, 1]} : vector<8x96xf32> to vector<8x32xf32>
    %402 = vector.extract_strided_slice %399 {offsets = [0, 64], sizes = [8, 32], strides = [1, 1]} : vector<8x96xf32> to vector<8x32xf32>
    %403 = vector.extract_strided_slice %377 {offsets = [0, 96], sizes = [8, 32], strides = [1, 1]} : vector<8x128xf32> to vector<8x32xf32>
    %404 = math.tanh %403 : vector<8x32xf32>
    %405 = arith.mulf %401, %358 : vector<8x32xf32>
    %406 = arith.mulf %400, %404 : vector<8x32xf32>
    %407 = arith.addf %405, %406 : vector<8x32xf32>
    %408 = math.tanh %407 : vector<8x32xf32>
    %409 = arith.mulf %402, %408 : vector<8x32xf32>
    %410 = tpu.concatenate %393, %409 in 1 : vector<8x32xf32>, vector<8x32xf32> -> vector<8x64xf32>
    %411 = arith.maximumf %362, %410 : vector<8x64xf32>
    %412 = arith.truncf %410 : vector<8x64xf32> to vector<8x64xbf16>
    %c8_i32 = arith.constant 8 : i32
    %413 = math.tanh %411 : vector<8x64xf32>
    %c0_85 = arith.constant 0 : index
    %c0_86 = arith.constant 0 : index
    %414 = vector.load %arg6[%c0_85, %c0_86] : memref<8x64xf32, #tpu.memory_space<vmem>>, vector<8x64xf32>
    tpu.vector_store %arg6[%c0_85, %c0_86], %413 {strides = array<i32>} : memref<8x64xf32, #tpu.memory_space<vmem>>, vector<8x64xf32>,
    return
  }
}

</mosaic_0001>

<bundles_post_ra>
// kernel: tpu_custom_call.1
= control target key start
LH: loop header
LB: loop body
LE: loop exit
PB: predicated region body
PF: predicated region fallthrough
CT: control target
= control target key end

     0   :  { %11 = vsyncpa [#allocation5], 0  ;;  %s1933_s0 = inlined_call_operand.vmem [shape: bf16[64,32], index: 0, kind: input, shape index: {}]   ;;  %s1934_s1 = inlined_call_operand.vmem [shape: bf16[32,128], index: 1, kind: input, shape index: {}]   ;;  %s1935_s2 = inlined_call_operand.vmem [shape: bf16[32,128], index: 2, kind: input, shape index: {}]   ;;  %s1936_s3 = inlined_call_operand.hbm [shape: bf16[64,256], index: 3, kind: input, shape index: {}]   ;;  %s1937_s4 = inlined_call_operand.vmem [shape: f32[1,128], index: 4, kind: input, shape index: {}]   ;;  %s1938_s5 = inlined_call_operand.vmem [shape: f32[1,128], index: 5, kind: input, shape index: {}]   ;;  %s1939_s6 = inlined_call_operand.hbm [shape: f32[8,64], index: 6, kind: output, shape index: {}]  }
   0x1   :  { %12 = vsyncpa [#allocation6], 0  ;;  %s1575_s21 = smov [#allocation4]   ;;  %s1527_s25 = scalar_lea.hbm %s1936_s3, 1024 }
   0x2   :  { %s24_s22 = sshll.u32 %s1575_s21, 4  ;;  %p1528_p0 = scmp.ne.s32.totalorder %s1936_s3, %s1527_s25  ;;  %s25_s22 = int_to_ptr.vmem [resolvable:$true] %s24_s22 }
   0x3   :  { %p1531_p1 = scmp.lt.u32.totalorder %s1527_s25, %s1936_s3 }
   0x5   :  { %p1533_p2 = pnand %p1531_p1, %p1528_p0 }
   0x7   :  { %1536 = shalt.err (!%p1533_p2)
}
   0x8   :  { %s1537_s30 = scalar_lea.vmem %s25_s22, 1024  ;;  %p1542_p4 = scmp.lt.s32.totalorder %s25_s22, %s25_s22 }
   0x9   :  { %p1538_p3 = scmp.ne.s32.totalorder %s25_s22, %s1537_s30  ;;  %p1543_p5 = scmp.lt.s32.totalorder %s1537_s30, %s1537_s30 }
   0xb   :  { %p1544_p6 = por %p1543_p5, %p1542_p4 }
   0xd   :  { %p1545_p7 = pnand %p1544_p6, %p1538_p3 }
   0xf   :  { %1548 = shalt.err (!%p1545_p7)
}
  0x10   :  { %s1576_s7 = smov 128   ;;  %s1577_s8 = smov 8  }
  0x11   :  { %30 = dma.hbm_to_vmem [thread:$0]  %s1936_s3, 1024, %s25_s22, [#allocation5], %s1576_s7, %s1576_s7, %s1577_s8  }
  0x12   :  { %1571 = dma.done.wait [#allocation5], 1024  }
  0x13   :  { %1572 = vsyncadd [#allocation5], 4294966272  ;;  %v1377_v0 = vld [vmem:[%s1934_s1] sm:$0xff]   ;;  %v1379_v2 = vld [vmem:[%s1934_s1 + $0x8] sm:$0xff]   ;;  %vm90_vm0 = vcmask 261120   ;;  %v1578_v16 = vmov 0  }
  0x14   :  { %v1378_v1 = vld [vmem:[%s1935_s2] sm:$0xff]   ;;  %1345 = vmatprep.subr.bf16.mxu0 %v1377_v0  ;;  %v1380_v3 = vld [vmem:[%s1935_s2 + $0x8] sm:$0xff]   ;;  %v1655_v8 = vld [vmem:[#allocation4 + $0x14] ss:$8 sps:$4 sm:$0xff]   ;;  %s1581_s27 = smov 96   ;;  %vm336_vm1 = vcmask 523264  }
  0x15   :  { %1357 = vmatprep.subr.bf16.mxu1 %v1378_v1  ;;  %1346 = vmatpush3.bf16.msra.mxu0 %v1377_v0  ;;  %v1381_v4 = vld [vmem:[%s1933_s0] sm:$0xff]   ;;  %v1382_v5 = vld [vmem:[%s1933_s0 + $0x8] sm:$0xff]   ;;  %v1389_v9 = vld [vmem:[%s1933_s0 + $0x10] sm:$0xff]   ;;  %s1582_s28 = smov [#allocation7]  }
  0x16   :  { %1358 = vmatpush3.bf16.msra.mxu1 %v1378_v1  ;;  %1347 = vmatprep.subr.bf16.mxu0 %v1379_v2  ;;  %v1650_v6 = vld [vmem:[#allocation4 + $0x4] ss:$8 sps:$4 sm:$0xff]   ;;  %v1652_v7 = vld [vmem:[#allocation4] ss:$8 sps:$4 sm:$0xff]   ;;  %v1664_v10 = vld [vmem:[#allocation4 + $0x10] ss:$8 sps:$4 sm:$0xff]  }
  0x17   :  { %1359 = vmatprep.subr.bf16.mxu1 %v1380_v3  ;;  %1349 = vmatprep.mubr.msk.bf16.mxu0 %vm90_vm0, %v1381_v4  ;;  %v1668_v11 = vld [vmem:[#allocation4 + $0x24] ss:$8 sps:$4 sm:$0xff]   ;;  %v1390_v12 = vld [vmem:[%s1933_s0 + $0x18] sm:$0xff]   ;;  %v1677_v13 = vld [vmem:[#allocation4 + $0x20] ss:$8 sps:$4 sm:$0xff]   ;;  %s1229_s29 = sshll.u32 %s1582_s28, 4  ;;  %s1230_s29 = int_to_ptr.vmem [resolvable:$true] %s1229_s29 }
  0x18   :  { %1361 = vmatprep.mubr.msk.bf16.mxu1 %vm90_vm0, %v1381_v4  ;;  %v1680_v14 = vld [vmem:[#allocation4 + $0x34] ss:$8 sps:$4 sm:$0xff]   ;;  %v1687_v15 = vld [vmem:[#allocation4 + $0x30] ss:$8 sps:$4 sm:$0xff]   ;;  %v1238_v17 = vld [vmem:[%s1937_s4] ss:$0 sm:$0xff]  ;;  %p1554_p9 = scmp.lt.s32.totalorder %s1230_s29, %s1230_s29 }
  0x19   :  { %1348 = vmatpush3.bf16.msra.mxu0 %v1379_v2  ;;  %v1249_v21 = vld [vmem:[%s1938_s5] ss:$0 sm:$0xff]  ;;  %s1579_s4 = smov 32   ;;  %s1580_s5 = smov 64  }
  0x1a   :  { %1360 = vmatpush3.bf16.msra.mxu1 %v1380_v3  ;;  %340 = vmatprep.subr.bf16.mxu0 %v1650_v6  ;;  %s1549_s30 = scalar_lea.vmem %s1230_s29, 128 }
  0x1b   :  { %449 = vmatprep.subr.bf16.mxu1 %v1650_v6  ;;  %p1550_p8 = scmp.ne.s32.totalorder %s1230_s29, %s1549_s30  ;;  %p1555_p10 = scmp.lt.s32.totalorder %s1549_s30, %s1549_s30 }
  0x1c   :  { %1350 = vmatmul.mubr.msk.bf16.vlgmr.msra.gmra.mrb[0].mxu0 %vm90_vm0, %v1382_v5 }
  0x1d   :  { %1362 = vmatmul.mubr.msk.bf16.vlgmr.msra.gmra.mrb[0].mxu1 %vm90_vm0, %v1382_v5  ;;  %341 = vmatpush1.bf16.msra.mxu0 %v1652_v7  ;;  %p1556_p11 = por %p1555_p10, %p1554_p9 }
  0x1e   :  { %342 = vmatprep.subr.bf16.mxu0 %v1655_v8  ;;  %1365 = vmatprep.mubr.msk.bf16.mxu1 %vm90_vm0, %v1389_v9 }
  0x1f   :  { %1353 = vmatprep.mubr.msk.bf16.mxu0 %vm90_vm0, %v1389_v9  ;;  %450 = vmatpush1.bf16.msra.mxu1 %v1652_v7  ;;  %p1557_p12 = pnand %p1556_p11, %p1550_p8 }
  0x20   :  { %451 = vmatprep.subr.bf16.mxu1 %v1655_v8 }
  0x21   :  { %343 = vmatpush1.bf16.msra.mxu0 %v1664_v10 }
  0x22   :  { %344 = vmatprep.subr.bf16.mxu0 %v1668_v11 }
  0x23   :  { %452 = vmatpush1.bf16.msra.mxu1 %v1664_v10 }
  0x24   :  { %1354 = vmatmul.mubr.msk.bf16.gmra.mrb[4].mxu0 %vm90_vm0, %v1390_v12  ;;  %453 = vmatprep.subr.bf16.mxu1 %v1668_v11 }
  0x25   :  { %1366 = vmatmul.mubr.msk.bf16.gmra.mrb[4].mxu1 %vm90_vm0, %v1390_v12  ;;  %345 = vmatpush1.bf16.msra.mxu0 %v1677_v13 }
  0x26   :  { %346 = vmatprep.subr.bf16.mxu0 %v1680_v14  ;;  %372 = vmatprep.mubr.bf16.mxu0 %v1578_v16 }
  0x27   :  { %454 = vmatpush1.bf16.msra.mxu1 %v1677_v13  ;;  %481 = vmatprep.mubr.bf16.mxu1 %v1578_v16 }
  0x28   :  { %455 = vmatprep.subr.bf16.mxu1 %v1680_v14 }
  0x29   :  { %347 = vmatpush1.bf16.msra.mxu0 %v1687_v15 }
  0x2a   :  { %560 = vmatprep.subr.bf16.mxu0 %v1650_v6 }
  0x2b   :  { %456 = vmatpush1.bf16.msra.mxu1 %v1687_v15 }
  0x2c   :  { %373 = vmatmul.mubr.bf16.vlgmr.msra.gmra.mrb[8].mxu0 %v1578_v16  ;;  %671 = vmatprep.subr.bf16.mxu1 %v1650_v6 }
  0x2d   :  { %561 = vmatpush1.bf16.msra.mxu0 %v1652_v7  ;;  %592 = vmatprep.mubr.bf16.mxu0 %v1578_v16 }
  0x2e   :  { %562 = vmatprep.subr.bf16.mxu0 %v1655_v8 }
  0x31   :  { %563 = vmatpush1.bf16.msra.mxu0 %v1664_v10 }
  0x32   :  { %564 = vmatprep.subr.bf16.mxu0 %v1668_v11 }
  0x35   :  { %565 = vmatpush1.bf16.msra.mxu0 %v1677_v13 }
  0x36   :  { %566 = vmatprep.subr.bf16.mxu0 %v1680_v14 }
  0x39   :  { %567 = vmatpush1.bf16.msra.mxu0 %v1687_v15 }
  0x3a   :  { %782 = vmatprep.subr.bf16.mxu0 %v1650_v6 }
  0xef   :  { %v1351_v18 = vpop.f32.mrb[0].mxu0 }
  0xf0   :  { %v146_v19 = vadd.f32 %v1351_v18, %v1238_v17  ;;  %v1363_v20 = vpop.f32.mrb[0].mxu1  ;;  %v137_v22 = vpop.f32.mrb[1].mxu0 }
  0xf1   :  { %v138_v23 = vadd.f32 %v1238_v17, %v137_v22  ;;  %v241_v24 = vpop.f32.mrb[1].mxu1  ;;  %v1352_v25 = vpop.f32.mrb[2].mxu0  ;;  %v250_v29 = vadd.f32 %v1363_v20, %v1249_v21 }
  0xf2   :  { %v149_v26 = vadd.f32 %v1352_v25, %v1238_v17  ;;  %v1364_v27 = vpop.f32.mrb[2].mxu1  ;;  %v140_v28 = vpop.f32.mrb[3].mxu0  ;;  %v242_v33 = vadd.f32 %v1249_v21, %v241_v24 }
  0xf3   :  { %v253_v30 = vadd.f32 %v1364_v27, %v1249_v21  ;;  %v141_v31 = vadd.f32 %v1238_v17, %v140_v28  ;;  %v244_v32 = vpop.f32.mrb[3].mxu1 }
  0xf4   :  { %v1295_v34 = vpack.c.bf16 %v149_v26, %v146_v19  ;;  %v245_v35 = vadd.f32 %v1249_v21, %v244_v32 }
  0xf5   :  { %v1315_v36 = vpack.c.bf16 %v253_v30, %v250_v29  ;;  %v1290_v37 = vpack.c.bf16 %v141_v31, %v138_v23 }
  0xf6   :  { %1327 = vst [vmem:[#allocation2 + $0x8] sm:$0xff] %v1295_v34   ;;  %v1310_v38 = vpack.c.bf16 %v245_v35, %v242_v33 }
  0xf7   :  { %1330 = vst [vmem:[#allocation3 + $0x8] sm:$0xff] %v1315_v36   ;;  %1291 = vst [vmem:[#allocation2] sm:$0xff] %v1290_v37   ;;  %v1355_v39 = vpop.f32.mrb[4].mxu0 }
  0xf8   :  { %1311 = vst [vmem:[#allocation3] sm:$0xff] %v1310_v38   ;;  %v1367_v40 = vpop.f32.mrb[4].mxu1  ;;  %v162_v41 = vadd.f32 %v1355_v39, %v1238_v17  ;;  %v153_v42 = vpop.f32.mrb[5].mxu0 }
  0xf9   :  { %v257_v43 = vpop.f32.mrb[5].mxu1  ;;  %v154_v44 = vadd.f32 %v1238_v17, %v153_v42  ;;  %v1356_v45 = vpop.f32.mrb[6].mxu0  ;;  %v266_v49 = vadd.f32 %v1367_v40, %v1249_v21 }
  0xfa   :  { %v1368_v46 = vpop.f32.mrb[6].mxu1  ;;  %v165_v47 = vadd.f32 %v1356_v45, %v1238_v17  ;;  %v156_v48 = vpop.f32.mrb[7].mxu0  ;;  %v258_v53 = vadd.f32 %v1249_v21, %v257_v43 }
  0xfb   :  { %v269_v50 = vadd.f32 %v1368_v46, %v1249_v21  ;;  %v260_v51 = vpop.f32.mrb[7].mxu1  ;;  %v157_v52 = vadd.f32 %v1238_v17, %v156_v48 }
  0xfc   :  { %v1305_v54 = vpack.c.bf16 %v165_v47, %v162_v41  ;;  %v261_v55 = vadd.f32 %v1249_v21, %v260_v51 }
  0xfd   :  { %v1325_v56 = vpack.c.bf16 %v269_v50, %v266_v49  ;;  %v1300_v57 = vpack.c.bf16 %v157_v52, %v154_v44 }
  0xfe   :  { %1329 = vst [vmem:[#allocation2 + $0x18] sm:$0xff] %v1305_v54   ;;  %v1320_v58 = vpack.c.bf16 %v261_v55, %v258_v53  ;;  %v1714_v59 = vld [vmem:[#allocation2] sm:$0xff]  }
  0xff   :  { %1332 = vst [vmem:[#allocation3 + $0x18] sm:$0xff] %v1325_v56   ;;  %1328 = vst [vmem:[#allocation2 + $0x10] sm:$0xff] %v1300_v57   ;;  %v374_v60 = vpop.f32.mrb[8].mxu0  ;;  %v382_v61 = vunpack.c.l.bf16 %v1714_v59  ;;  %v492_v44 = vunpack.c.h.bf16 %v1714_v59 }
 0x100   :  { %1331 = vst [vmem:[#allocation3 + $0x10] sm:$0xff] %v1320_v58   ;;  %v376_v62 = vpop.f32.mrb[9].mxu0 }
 0x101   :  { %v383_v63 = vadd.f32 %v382_v61, %v374_v60  ;;  %v378_v0 = vpop.f32.mrb[10].mxu0 }
 0x102   :  { %v379_v1 = vpop.f32.mrb[11].mxu0 }
 0x103   :  { %1397 = vtanh.f32 %v383_v63  ;;  %v1264_v12 = vmul.f32 -1.442695, %v383_v63 }
 0x106   :  { %v1717_v2 = vld [vmem:[#allocation3 + $0x18] sm:$0xff]  }
 0x107   :  { %v386_v3 = vunpack.c.h.bf16 %v1717_v2  ;;  %v496_v46 = vunpack.c.l.bf16 %v1717_v2 }
 0x109   :  { %v387_v4 = vadd.f32 %v386_v3, %v376_v62 }
 0x10b   :  { %1399 = vtanh.f32 %v387_v4  ;;  %v1265_v17 = vmul.f32 -1.442695, %v387_v4 }
 0x10c   :  { %1401 = vpow2.f32 %v1264_v12 }
 0x10d   :  { %v1398_v5 = vpop.eup %1397  ;;  %1403 = vpow2.f32 %v1265_v17 }
 0x10e   :  { %397 = vrot.lane.b32.xlu0 %v1398_v5, %s1579_s4 }
 0x115   :  { %v1400_v9 = vpop.eup %1399 }
 0x116   :  { %421 = vrot.lane.b32.xlu0 %v1400_v9, %s1579_s4  ;;  %v1402_v18 = vpop.eup %1401 }
 0x117   :  { %v391_v19 = vadd.f32 1.0, %v1402_v18  ;;  %v1404_v20 = vpop.eup %1403 }
 0x118   :  { %v415_v21 = vadd.f32 1.0, %v1404_v20 }
 0x119   :  { %1405 = vrcp.f32 %v391_v19 }
 0x11a   :  { %1407 = vrcp.f32 %v415_v21 }
 0x123   :  { %v1406_v22 = vpop.eup %1405 }
 0x124   :  { %v1408_v25 = vpop.eup %1407  ;;  %v395_v28 = vmul.f32 0.0, %v1406_v22 }
 0x125   :  { %v419_v31 = vmul.f32 0.0, %v1408_v25 }
 0x180   :  { %v398_v23 = vpop.permute.xlu0 %397 }
 0x181   :  { %v400_v24 = vmul.f32 %v1406_v22, %v398_v23 }
 0x183   :  { %402 = vrot.lane.b32.xlu1 %v400_v24, %s1579_s4 }
 0x188   :  { %v422_v26 = vpop.permute.xlu0 %421 }
 0x189   :  { %v424_v27 = vmul.f32 %v1408_v25, %v422_v26 }
 0x18b   :  { %426 = vrot.lane.b32.xlu1 %v424_v27, %s1579_s4  ;;  %v1782_v27 = vld [vmem:[#allocation2 + $0x8] sm:$0xff]  }
 0x1f5   :  { %v403_v29 = vpop.permute.xlu1 %402 }
 0x1f6   :  { %v1724_v30 = vadd.f32 %v403_v29, %v395_v28  ;;  %v1784_v28 = vld [vmem:[#allocation3 + $0x10] sm:$0xff]   ;;  %v603_v29 = vunpack.c.l.bf16 %v1782_v27 }
 0x1f8   :  { %1409 = vtanh.f32 %v1724_v30 }
 0x1fd   :  { %v427_v32 = vpop.permute.xlu1 %426 }
 0x1fe   :  { %v1727_v33 = vadd.f32 %v427_v32, %v419_v31  ;;  %v607_v31 = vunpack.c.h.bf16 %v1784_v28 }
 0x200   :  { %1411 = vtanh.f32 %v1727_v33 }
 0x202   :  { %v1410_v34 = vpop.eup %1409 }
 0x203   :  { %408 = vrot.lane.b32.xlu0 %v1410_v34, %s1579_s4 }
 0x20a   :  { %v1412_v35 = vpop.eup %1411 }
 0x20b   :  { %432 = vrot.lane.b32.xlu1 %v1412_v35, %s1579_s4 }
 0x275   :  { %v409_v36 = vpop.permute.xlu0 %408 }
 0x276   :  { %v411_v37 = vmul.f32 %v1406_v22, %v409_v36 }
 0x278   :  { %437 = vrot.lane.b32.xlu0 %v411_v37, %s1580_s5 }
 0x27d   :  { %v433_v38 = vpop.permute.xlu1 %432 }
 0x27e   :  { %v435_v39 = vmul.f32 %v1408_v25, %v433_v38 }
 0x280   :  { %441 = vrot.lane.b32.xlu1 %v435_v39, %s1581_s27 }
 0x2ea   :  { %v438_v40 = vpop.permute.xlu0 %437 }
 0x2f2   :  { %v442_v41 = vpop.permute.xlu1 %441 }
 0x2f3   :  { %v1735_v42 = vsel %vm90_vm0, %v438_v40, %v442_v41 }
 0x2f4   :  { %v445_v43 = vpack.c.bf16 %v1735_v42, %v1735_v42 }
 0x2f6   :  { %1266 = vmatmul.mubr.msk.bf16.vlgmr.msra.gmra.mrb[8].mxu1 %vm336_vm1, %v445_v43 }
 0x2f7   :  { %672 = vmatpush1.bf16.msra.mxu1 %v1652_v7  ;;  %703 = vmatprep.mubr.bf16.mxu1 %v1578_v16 }
 0x2f8   :  { %673 = vmatprep.subr.bf16.mxu1 %v1655_v8 }
 0x2fb   :  { %674 = vmatpush1.bf16.msra.mxu1 %v1664_v10 }
 0x2fc   :  { %675 = vmatprep.subr.bf16.mxu1 %v1668_v11 }
 0x2ff   :  { %676 = vmatpush1.bf16.msra.mxu1 %v1677_v13 }
 0x300   :  { %677 = vmatprep.subr.bf16.mxu1 %v1680_v14 }
 0x303   :  { %678 = vmatpush1.bf16.msra.mxu1 %v1687_v15 }
 0x304   :  { %893 = vmatprep.subr.bf16.mxu1 %v1650_v6 }
 0x3c9   :  { %v483_v45 = vpop.f32.mrb[8].mxu1 }
 0x3ca   :  { %v493_v47 = vadd.f32 %v492_v44, %v483_v45  ;;  %v485_v48 = vpop.f32.mrb[9].mxu1 }
 0x3cb   :  { %v497_v49 = vadd.f32 %v496_v46, %v485_v48  ;;  %v487_v50 = vpop.f32.mrb[10].mxu1 }
 0x3cc   :  { %1413 = vtanh.f32 %v493_v47  ;;  %v488_v51 = vpop.f32.mrb[11].mxu1  ;;  %v1267_v54 = vmul.f32 -1.442695, %v493_v47 }
 0x3cd   :  { %1415 = vtanh.f32 %v497_v49  ;;  %v1268_v55 = vmul.f32 -1.442695, %v497_v49 }
 0x3ce   :  { %1417 = vpow2.f32 %v1267_v54 }
 0x3cf   :  { %1419 = vpow2.f32 %v1268_v55 }
 0x3d6   :  { %v1414_v52 = vpop.eup %1413 }
 0x3d7   :  { %v1416_v53 = vpop.eup %1415  ;;  %507 = vrot.lane.b32.xlu0 %v1414_v52, %s1579_s4 }
 0x3d8   :  { %531 = vrot.lane.b32.xlu1 %v1416_v53, %s1579_s4  ;;  %v1418_v56 = vpop.eup %1417 }
 0x3d9   :  { %v1420_v57 = vpop.eup %1419  ;;  %v501_v58 = vadd.f32 1.0, %v1418_v56 }
 0x3da   :  { %v525_v59 = vadd.f32 1.0, %v1420_v57 }
 0x3db   :  { %1421 = vrcp.f32 %v501_v58 }
 0x3dc   :  { %1423 = vrcp.f32 %v525_v59 }
 0x3e5   :  { %v1422_v60 = vpop.eup %1421 }
 0x3e6   :  { %v1424_v62 = vpop.eup %1423  ;;  %v505_v2 = vmul.f32 %v1422_v60, %v1724_v30 }
 0x3e7   :  { %v529_v4 = vmul.f32 %v1424_v62, %v1727_v33 }
 0x449   :  { %v508_v61 = vpop.permute.xlu0 %507 }
 0x44a   :  { %v510_v63 = vmul.f32 %v1422_v60, %v508_v61  ;;  %v532_v0 = vpop.permute.xlu1 %531 }
 0x44b   :  { %v534_v1 = vmul.f32 %v1424_v62, %v532_v0 }
 0x44c   :  { %512 = vrot.lane.b32.xlu0 %v510_v63, %s1579_s4 }
 0x44d   :  { %536 = vrot.lane.b32.xlu1 %v534_v1, %s1579_s4 }
 0x4be   :  { %v513_v3 = vpop.permute.xlu0 %512 }
 0x4bf   :  { %v1757_v5 = vadd.f32 %v513_v3, %v505_v2  ;;  %v537_v9 = vpop.permute.xlu1 %536 }
 0x4c0   :  { %v1759_v12 = vadd.f32 %v537_v9, %v529_v4 }
 0x4c1   :  { %1425 = vtanh.f32 %v1757_v5 }
 0x4c2   :  { %1427 = vtanh.f32 %v1759_v12 }
 0x4cb   :  { %v1426_v17 = vpop.eup %1425 }
 0x4cc   :  { %v1428_v18 = vpop.eup %1427  ;;  %518 = vrot.lane.b32.xlu0 %v1426_v17, %s1579_s4 }
 0x4cd   :  { %542 = vrot.lane.b32.xlu1 %v1428_v18, %s1579_s4 }
 0x53e   :  { %v519_v19 = vpop.permute.xlu0 %518 }
 0x53f   :  { %v521_v20 = vmul.f32 %v1422_v60, %v519_v19  ;;  %v543_v21 = vpop.permute.xlu1 %542 }
 0x540   :  { %v545_v22 = vmul.f32 %v1424_v62, %v543_v21 }
 0x541   :  { %547 = vrot.lane.b32.xlu0 %v521_v20, %s1580_s5 }
 0x542   :  { %551 = vrot.lane.b32.xlu1 %v545_v22, %s1581_s27 }
 0x5b3   :  { %v548_v23 = vpop.permute.xlu0 %547 }
 0x5b4   :  { %v552_v24 = vpop.permute.xlu1 %551 }
 0x5b5   :  { %v1768_v25 = vsel %vm90_vm0, %v548_v23, %v552_v24 }
 0x5b6   :  { %v556_v26 = vpack.c.bf16 %v1768_v25, %v1768_v25  ;;  %v555_v1 = vmax.f32 %v1735_v42, %v1768_v25  ;;  %v714_v42 = vunpack.c.h.bf16 %v1782_v27 }
 0x5b8   :  { %1269 = vmatmul.mubr.msk.bf16.vlgmr.msra.gmra.mrb[12].mxu0 %vm336_vm1, %v556_v26 }
 0x5b9   :  { %783 = vmatpush1.bf16.msra.mxu0 %v1652_v7  ;;  %814 = vmatprep.mubr.bf16.mxu0 %v1578_v16 }
 0x5ba   :  { %784 = vmatprep.subr.bf16.mxu0 %v1655_v8 }
 0x5bd   :  { %785 = vmatpush1.bf16.msra.mxu0 %v1664_v10 }
 0x5be   :  { %786 = vmatprep.subr.bf16.mxu0 %v1668_v11 }
 0x5c1   :  { %787 = vmatpush1.bf16.msra.mxu0 %v1677_v13 }
 0x5c2   :  { %788 = vmatprep.subr.bf16.mxu0 %v1680_v14 }
 0x5c5   :  { %789 = vmatpush1.bf16.msra.mxu0 %v1687_v15 }
 0x5c6   :  { %1004 = vmatprep.subr.bf16.mxu0 %v1650_v6 }
 0x68b   :  { %v594_v30 = vpop.f32.mrb[12].mxu0 }
 0x68c   :  { %v604_v32 = vadd.f32 %v603_v29, %v594_v30  ;;  %v596_v33 = vpop.f32.mrb[13].mxu0 }
 0x68d   :  { %v608_v34 = vadd.f32 %v607_v31, %v596_v33  ;;  %v598_v35 = vpop.f32.mrb[14].mxu0 }
 0x68e   :  { %1429 = vtanh.f32 %v604_v32  ;;  %v599_v36 = vpop.f32.mrb[15].mxu0  ;;  %v1270_v39 = vmul.f32 -1.442695, %v604_v32 }
 0x68f   :  { %1431 = vtanh.f32 %v608_v34  ;;  %v1271_v40 = vmul.f32 -1.442695, %v608_v34 }
 0x690   :  { %1433 = vpow2.f32 %v1270_v39 }
 0x691   :  { %1435 = vpow2.f32 %v1271_v40 }
 0x698   :  { %v1430_v37 = vpop.eup %1429 }
 0x699   :  { %v1432_v38 = vpop.eup %1431  ;;  %618 = vrot.lane.b32.xlu0 %v1430_v37, %s1579_s4 }
 0x69a   :  { %642 = vrot.lane.b32.xlu1 %v1432_v38, %s1579_s4  ;;  %v1434_v41 = vpop.eup %1433 }
 0x69b   :  { %v1436_v43 = vpop.eup %1435  ;;  %v612_v44 = vadd.f32 1.0, %v1434_v41 }
 0x69c   :  { %v636_v45 = vadd.f32 1.0, %v1436_v43 }
 0x69d   :  { %1437 = vrcp.f32 %v612_v44 }
 0x69e   :  { %1439 = vrcp.f32 %v636_v45 }
 0x6a7   :  { %v1438_v46 = vpop.eup %1437 }
 0x6a8   :  { %v1440_v48 = vpop.eup %1439  ;;  %v616_v52 = vmul.f32 %v1438_v46, %v1757_v5 }
 0x6a9   :  { %v640_v54 = vmul.f32 %v1440_v48, %v1759_v12  ;;  %v718_v12 = vunpack.c.l.bf16 %v1784_v28 }
 0x70b   :  { %v619_v47 = vpop.permute.xlu0 %618 }
 0x70c   :  { %v621_v49 = vmul.f32 %v1438_v46, %v619_v47  ;;  %v643_v50 = vpop.permute.xlu1 %642 }
 0x70d   :  { %v645_v51 = vmul.f32 %v1440_v48, %v643_v50 }
 0x70e   :  { %623 = vrot.lane.b32.xlu0 %v621_v49, %s1579_s4 }
 0x70f   :  { %647 = vrot.lane.b32.xlu1 %v645_v51, %s1579_s4 }
 0x780   :  { %v624_v53 = vpop.permute.xlu0 %623 }
 0x781   :  { %v1794_v55 = vadd.f32 %v624_v53, %v616_v52  ;;  %v648_v56 = vpop.permute.xlu1 %647  ;;  %v1853_v53 = vld [vmem:[#allocation2 + $0x10] sm:$0xff]  }
 0x782   :  { %v1796_v57 = vadd.f32 %v648_v56, %v640_v54  ;;  %v1855_v54 = vld [vmem:[#allocation3 + $0x8] sm:$0xff]  }
 0x783   :  { %1441 = vtanh.f32 %v1794_v55 }
 0x784   :  { %1443 = vtanh.f32 %v1796_v57 }
 0x78d   :  { %v1442_v58 = vpop.eup %1441 }
 0x78e   :  { %v1444_v59 = vpop.eup %1443  ;;  %629 = vrot.lane.b32.xlu0 %v1442_v58, %s1579_s4 }
 0x78f   :  { %653 = vrot.lane.b32.xlu1 %v1444_v59, %s1579_s4 }
 0x800   :  { %v630_v60 = vpop.permute.xlu0 %629 }
 0x801   :  { %v632_v61 = vmul.f32 %v1438_v46, %v630_v60  ;;  %v654_v62 = vpop.permute.xlu1 %653 }
 0x802   :  { %v656_v63 = vmul.f32 %v1440_v48, %v654_v62 }
 0x803   :  { %658 = vrot.lane.b32.xlu0 %v632_v61, %s1580_s5 }
 0x804   :  { %662 = vrot.lane.b32.xlu1 %v656_v63, %s1581_s27 }
 0x875   :  { %v659_v0 = vpop.permute.xlu0 %658 }
 0x876   :  { %v663_v2 = vpop.permute.xlu1 %662 }
 0x877   :  { %v665_v3 = vsel %vm90_vm0, %v659_v0, %v663_v2 }
 0x878   :  { %v1807_v4 = vmax.f32 %v555_v1, %v665_v3  ;;  %v667_v5 = vpack.c.bf16 %v665_v3, %v665_v3 }
 0x87a   :  { %1272 = vmatmul.mubr.msk.bf16.vlgmr.msra.gmra.mrb[12].mxu1 %vm336_vm1, %v667_v5 }
 0x87b   :  { %894 = vmatpush1.bf16.msra.mxu1 %v1652_v7  ;;  %925 = vmatprep.mubr.bf16.mxu1 %v1578_v16 }
 0x87c   :  { %895 = vmatprep.subr.bf16.mxu1 %v1655_v8 }
 0x87f   :  { %896 = vmatpush1.bf16.msra.mxu1 %v1664_v10 }
 0x880   :  { %897 = vmatprep.subr.bf16.mxu1 %v1668_v11 }
 0x883   :  { %898 = vmatpush1.bf16.msra.mxu1 %v1677_v13 }
 0x884   :  { %899 = vmatprep.subr.bf16.mxu1 %v1680_v14 }
 0x887   :  { %900 = vmatpush1.bf16.msra.mxu1 %v1687_v15 }
 0x888   :  { %1115 = vmatprep.subr.bf16.mxu1 %v1650_v6 }
 0x94d   :  { %v705_v9 = vpop.f32.mrb[12].mxu1 }
 0x94e   :  { %v715_v17 = vadd.f32 %v714_v42, %v705_v9  ;;  %v707_v18 = vpop.f32.mrb[13].mxu1 }
 0x94f   :  { %v719_v19 = vadd.f32 %v718_v12, %v707_v18  ;;  %v709_v20 = vpop.f32.mrb[14].mxu1 }
 0x950   :  { %1445 = vtanh.f32 %v715_v17  ;;  %v710_v21 = vpop.f32.mrb[15].mxu1  ;;  %v1273_v24 = vmul.f32 -1.442695, %v715_v17 }
 0x951   :  { %1447 = vtanh.f32 %v719_v19  ;;  %v1274_v6 = vmul.f32 -1.442695, %v719_v19 }
 0x952   :  { %1449 = vpow2.f32 %v1273_v24 }
 0x953   :  { %1451 = vpow2.f32 %v1274_v6 }
 0x95a   :  { %v1446_v22 = vpop.eup %1445 }
 0x95b   :  { %v1448_v23 = vpop.eup %1447  ;;  %729 = vrot.lane.b32.xlu0 %v1446_v22, %s1579_s4 }
 0x95c   :  { %753 = vrot.lane.b32.xlu1 %v1448_v23, %s1579_s4  ;;  %v1450_v25 = vpop.eup %1449 }
 0x95d   :  { %v1452_v26 = vpop.eup %1451  ;;  %v723_v27 = vadd.f32 1.0, %v1450_v25 }
 0x95e   :  { %v747_v28 = vadd.f32 1.0, %v1452_v26 }
 0x95f   :  { %1453 = vrcp.f32 %v723_v27 }
 0x960   :  { %1455 = vrcp.f32 %v747_v28 }
 0x969   :  { %v1454_v29 = vpop.eup %1453 }
 0x96a   :  { %v1456_v31 = vpop.eup %1455  ;;  %v727_v35 = vmul.f32 %v1454_v29, %v1794_v55  ;;  %v825_v55 = vunpack.c.l.bf16 %v1853_v53 }
 0x96b   :  { %v751_v37 = vmul.f32 %v1456_v31, %v1796_v57  ;;  %v829_v57 = vunpack.c.h.bf16 %v1855_v54 }
 0x9cd   :  { %v730_v30 = vpop.permute.xlu0 %729 }
 0x9ce   :  { %v732_v32 = vmul.f32 %v1454_v29, %v730_v30  ;;  %v754_v33 = vpop.permute.xlu1 %753 }
 0x9cf   :  { %v756_v34 = vmul.f32 %v1456_v31, %v754_v33 }
 0x9d0   :  { %734 = vrot.lane.b32.xlu0 %v732_v32, %s1579_s4 }
 0x9d1   :  { %758 = vrot.lane.b32.xlu1 %v756_v34, %s1579_s4 }
 0xa42   :  { %v735_v36 = vpop.permute.xlu0 %734 }
 0xa43   :  { %v1827_v38 = vadd.f32 %v735_v36, %v727_v35  ;;  %v759_v39 = vpop.permute.xlu1 %758 }
 0xa44   :  { %v1829_v40 = vadd.f32 %v759_v39, %v751_v37  ;;  %v940_v39 = vunpack.c.l.bf16 %v1855_v54 }
 0xa45   :  { %1457 = vtanh.f32 %v1827_v38 }
 0xa46   :  { %1459 = vtanh.f32 %v1829_v40 }
 0xa4f   :  { %v1458_v41 = vpop.eup %1457 }
 0xa50   :  { %v1460_v43 = vpop.eup %1459  ;;  %740 = vrot.lane.b32.xlu0 %v1458_v41, %s1579_s4 }
 0xa51   :  { %764 = vrot.lane.b32.xlu1 %v1460_v43, %s1579_s4 }
 0xac2   :  { %v741_v44 = vpop.permute.xlu0 %740 }
 0xac3   :  { %v743_v45 = vmul.f32 %v1454_v29, %v741_v44  ;;  %v765_v46 = vpop.permute.xlu1 %764 }
 0xac4   :  { %v767_v47 = vmul.f32 %v1456_v31, %v765_v46 }
 0xac5   :  { %769 = vrot.lane.b32.xlu0 %v743_v45, %s1580_s5 }
 0xac6   :  { %773 = vrot.lane.b32.xlu1 %v767_v47, %s1581_s27 }
 0xb37   :  { %v770_v48 = vpop.permute.xlu0 %769 }
 0xb38   :  { %v774_v49 = vpop.permute.xlu1 %773 }
 0xb39   :  { %v1838_v50 = vsel %vm90_vm0, %v770_v48, %v774_v49 }
 0xb3a   :  { %v777_v51 = vmax.f32 %v1807_v4, %v1838_v50  ;;  %v778_v52 = vpack.c.bf16 %v1838_v50, %v1838_v50  ;;  %v936_v4 = vunpack.c.h.bf16 %v1853_v53 }
 0xb3c   :  { %1275 = vmatmul.mubr.msk.bf16.vlgmr.msra.gmra.mrb[16].mxu0 %vm336_vm1, %v778_v52 }
 0xb3d   :  { %1005 = vmatpush1.bf16.msra.mxu0 %v1652_v7  ;;  %1036 = vmatprep.mubr.bf16.mxu0 %v1578_v16 }
 0xb3e   :  { %1006 = vmatprep.subr.bf16.mxu0 %v1655_v8 }
 0xb41   :  { %1007 = vmatpush1.bf16.msra.mxu0 %v1664_v10 }
 0xb42   :  { %1008 = vmatprep.subr.bf16.mxu0 %v1668_v11 }
 0xb45   :  { %1009 = vmatpush1.bf16.msra.mxu0 %v1677_v13 }
 0xb46   :  { %1010 = vmatprep.subr.bf16.mxu0 %v1680_v14 }
 0xb49   :  { %1011 = vmatpush1.bf16.msra.mxu0 %v1687_v15 }
 0xc0f   :  { %v816_v56 = vpop.f32.mrb[16].mxu0 }
 0xc10   :  { %v826_v58 = vadd.f32 %v825_v55, %v816_v56  ;;  %v818_v59 = vpop.f32.mrb[17].mxu0 }
 0xc11   :  { %v830_v60 = vadd.f32 %v829_v57, %v818_v59  ;;  %v820_v61 = vpop.f32.mrb[18].mxu0 }
 0xc12   :  { %1461 = vtanh.f32 %v826_v58  ;;  %v821_v62 = vpop.f32.mrb[19].mxu0  ;;  %v1276_v1 = vmul.f32 -1.442695, %v826_v58 }
 0xc13   :  { %1463 = vtanh.f32 %v830_v60  ;;  %v1277_v2 = vmul.f32 -1.442695, %v830_v60 }
 0xc14   :  { %1465 = vpow2.f32 %v1276_v1 }
 0xc15   :  { %1467 = vpow2.f32 %v1277_v2 }
 0xc1c   :  { %v1462_v63 = vpop.eup %1461 }
 0xc1d   :  { %v1464_v0 = vpop.eup %1463  ;;  %840 = vrot.lane.b32.xlu0 %v1462_v63, %s1579_s4 }
 0xc1e   :  { %864 = vrot.lane.b32.xlu1 %v1464_v0, %s1579_s4  ;;  %v1466_v3 = vpop.eup %1465 }
 0xc1f   :  { %v1468_v5 = vpop.eup %1467  ;;  %v834_v42 = vadd.f32 1.0, %v1466_v3 }
 0xc20   :  { %v858_v9 = vadd.f32 1.0, %v1468_v5 }
 0xc21   :  { %1469 = vrcp.f32 %v834_v42  ;;  %v1046_v42 = vld [vmem:[#allocation2 + $0x18] sm:$0xff]  }
 0xc22   :  { %1471 = vrcp.f32 %v858_v9  ;;  %v1897_v9 = vld [vmem:[#allocation3] sm:$0xff]  }
 0xc2b   :  { %v1470_v12 = vpop.eup %1469 }
 0xc2c   :  { %v1472_v18 = vpop.eup %1471  ;;  %v838_v22 = vmul.f32 %v1470_v12, %v1827_v38 }
 0xc2d   :  { %v862_v24 = vmul.f32 %v1472_v18, %v1829_v40 }
 0xc8f   :  { %v841_v17 = vpop.permute.xlu0 %840 }
 0xc90   :  { %v843_v19 = vmul.f32 %v1470_v12, %v841_v17  ;;  %v865_v20 = vpop.permute.xlu1 %864 }
 0xc91   :  { %v867_v21 = vmul.f32 %v1472_v18, %v865_v20 }
 0xc92   :  { %845 = vrot.lane.b32.xlu0 %v843_v19, %s1579_s4 }
 0xc93   :  { %869 = vrot.lane.b32.xlu1 %v867_v21, %s1579_s4 }
 0xd04   :  { %v846_v23 = vpop.permute.xlu0 %845 }
 0xd05   :  { %v848_v6 = vadd.f32 %v846_v23, %v838_v22  ;;  %v870_v25 = vpop.permute.xlu1 %869 }
 0xd06   :  { %v872_v26 = vadd.f32 %v870_v25, %v862_v24 }
 0xd07   :  { %1473 = vtanh.f32 %v848_v6 }
 0xd08   :  { %1475 = vtanh.f32 %v872_v26 }
 0xd11   :  { %v1474_v27 = vpop.eup %1473 }
 0xd12   :  { %v1476_v28 = vpop.eup %1475  ;;  %851 = vrot.lane.b32.xlu0 %v1474_v27, %s1579_s4 }
 0xd13   :  { %875 = vrot.lane.b32.xlu1 %v1476_v28, %s1579_s4 }
 0xd84   :  { %v852_v29 = vpop.permute.xlu0 %851 }
 0xd85   :  { %v854_v30 = vmul.f32 %v1470_v12, %v852_v29  ;;  %v876_v31 = vpop.permute.xlu1 %875  ;;  %v1047_v12 = vunpack.c.l.bf16 %v1046_v42 }
 0xd86   :  { %v878_v32 = vmul.f32 %v1472_v18, %v876_v31  ;;  %v1051_v18 = vunpack.c.h.bf16 %v1897_v9 }
 0xd87   :  { %880 = vrot.lane.b32.xlu0 %v854_v30, %s1580_s5 }
 0xd88   :  { %884 = vrot.lane.b32.xlu1 %v878_v32, %s1581_s27 }
 0xdf9   :  { %v881_v33 = vpop.permute.xlu0 %880 }
 0xdfa   :  { %v885_v34 = vpop.permute.xlu1 %884 }
 0xdfb   :  { %v887_v35 = vsel %vm90_vm0, %v881_v33, %v885_v34 }
 0xdfc   :  { %v1873_v36 = vmax.f32 %v777_v51, %v887_v35  ;;  %v889_v37 = vpack.c.bf16 %v887_v35, %v887_v35 }
 0xdfe   :  { %1278 = vmatmul.mubr.msk.bf16.vlgmr.msra.gmra.mrb[16].mxu1 %vm336_vm1, %v889_v37 }
 0xdff   :  { %1116 = vmatpush1.bf16.msra.mxu1 %v1652_v7  ;;  %1147 = vmatprep.mubr.bf16.mxu1 %v1578_v16 }
 0xe00   :  { %1117 = vmatprep.subr.bf16.mxu1 %v1655_v8 }
 0xe03   :  { %1118 = vmatpush1.bf16.msra.mxu1 %v1664_v10 }
 0xe04   :  { %1119 = vmatprep.subr.bf16.mxu1 %v1668_v11 }
 0xe07   :  { %1120 = vmatpush1.bf16.msra.mxu1 %v1677_v13 }
 0xe08   :  { %1121 = vmatprep.subr.bf16.mxu1 %v1680_v14 }
 0xe0b   :  { %1122 = vmatpush1.bf16.msra.mxu1 %v1687_v15 }
 0xed1   :  { %v927_v38 = vpop.f32.mrb[16].mxu1 }
 0xed2   :  { %v937_v7 = vadd.f32 %v936_v4, %v927_v38  ;;  %v929_v40 = vpop.f32.mrb[17].mxu1 }
 0xed3   :  { %v941_v16 = vadd.f32 %v940_v39, %v929_v40  ;;  %v931_v41 = vpop.f32.mrb[18].mxu1 }
 0xed4   :  { %1477 = vtanh.f32 %v937_v7  ;;  %v932_v8 = vpop.f32.mrb[19].mxu1  ;;  %v1279_v13 = vmul.f32 -1.442695, %v937_v7 }
 0xed5   :  { %1479 = vtanh.f32 %v941_v16  ;;  %v1280_v14 = vmul.f32 -1.442695, %v941_v16 }
 0xed6   :  { %1481 = vpow2.f32 %v1279_v13 }
 0xed7   :  { %1483 = vpow2.f32 %v1280_v14 }
 0xede   :  { %v1478_v10 = vpop.eup %1477 }
 0xedf   :  { %v1480_v11 = vpop.eup %1479  ;;  %951 = vrot.lane.b32.xlu0 %v1478_v10, %s1579_s4 }
 0xee0   :  { %975 = vrot.lane.b32.xlu1 %v1480_v11, %s1579_s4  ;;  %v1482_v15 = vpop.eup %1481 }
 0xee1   :  { %v1484_v43 = vpop.eup %1483  ;;  %v945_v44 = vadd.f32 1.0, %v1482_v15 }
 0xee2   :  { %v969_v45 = vadd.f32 1.0, %v1484_v43 }
 0xee3   :  { %1485 = vrcp.f32 %v945_v44 }
 0xee4   :  { %1487 = vrcp.f32 %v969_v45 }
 0xeed   :  { %v1486_v46 = vpop.eup %1485 }
 0xeee   :  { %v1488_v48 = vpop.eup %1487  ;;  %v949_v52 = vmul.f32 %v1486_v46, %v848_v6 }
 0xeef   :  { %v973_v54 = vmul.f32 %v1488_v48, %v872_v26 }
 0xf51   :  { %v952_v47 = vpop.permute.xlu0 %951 }
 0xf52   :  { %v954_v49 = vmul.f32 %v1486_v46, %v952_v47  ;;  %v976_v50 = vpop.permute.xlu1 %975 }
 0xf53   :  { %v978_v51 = vmul.f32 %v1488_v48, %v976_v50 }
 0xf54   :  { %956 = vrot.lane.b32.xlu0 %v954_v49, %s1579_s4 }
 0xf55   :  { %980 = vrot.lane.b32.xlu1 %v978_v51, %s1579_s4 }
 0xfc6   :  { %v957_v53 = vpop.permute.xlu0 %956 }
 0xfc7   :  { %v959_v55 = vadd.f32 %v957_v53, %v949_v52  ;;  %v981_v56 = vpop.permute.xlu1 %980 }
 0xfc8   :  { %v983_v57 = vadd.f32 %v981_v56, %v973_v54 }
 0xfc9   :  { %1489 = vtanh.f32 %v959_v55 }
 0xfca   :  { %1491 = vtanh.f32 %v983_v57 }
 0xfd3   :  { %v1490_v58 = vpop.eup %1489 }
 0xfd4   :  { %v1492_v59 = vpop.eup %1491  ;;  %962 = vrot.lane.b32.xlu0 %v1490_v58, %s1579_s4 }
 0xfd5   :  { %986 = vrot.lane.b32.xlu1 %v1492_v59, %s1579_s4 }
0x1046   :  { %v963_v60 = vpop.permute.xlu0 %962 }
0x1047   :  { %v965_v61 = vmul.f32 %v1486_v46, %v963_v60  ;;  %v987_v62 = vpop.permute.xlu1 %986  ;;  %v1158_v46 = vunpack.c.h.bf16 %v1046_v42 }
0x1048   :  { %v989_v63 = vmul.f32 %v1488_v48, %v987_v62  ;;  %v1161_v48 = vunpack.c.l.bf16 %v1897_v9 }
0x1049   :  { %991 = vrot.lane.b32.xlu0 %v965_v61, %s1580_s5 }
0x104a   :  { %995 = vrot.lane.b32.xlu1 %v989_v63, %s1581_s27 }
0x10bb   :  { %v992_v0 = vpop.permute.xlu0 %991 }
0x10bc   :  { %v996_v1 = vpop.permute.xlu1 %995 }
0x10bd   :  { %v998_v2 = vsel %vm90_vm0, %v992_v0, %v996_v1 }
0x10be   :  { %v999_v3 = vmax.f32 %v1873_v36, %v998_v2  ;;  %v1000_v5 = vpack.c.bf16 %v998_v2, %v998_v2 }
0x10c0   :  { %1281 = vmatmul.mubr.msk.bf16.vlgmr.msra.gmra.mrb[20].mxu0 %vm336_vm1, %v1000_v5 }
0x1193   :  { %v1038_v17 = vpop.f32.mrb[20].mxu0 }
0x1194   :  { %v1048_v19 = vadd.f32 %v1047_v12, %v1038_v17  ;;  %v1040_v20 = vpop.f32.mrb[21].mxu0 }
0x1195   :  { %v1052_v21 = vadd.f32 %v1051_v18, %v1040_v20  ;;  %v1042_v22 = vpop.f32.mrb[22].mxu0 }
0x1196   :  { %1493 = vtanh.f32 %v1048_v19  ;;  %v1043_v23 = vpop.f32.mrb[23].mxu0  ;;  %v1282_v25 = vmul.f32 -1.442695, %v1048_v19 }
0x1197   :  { %1495 = vtanh.f32 %v1052_v21  ;;  %v1283_v26 = vmul.f32 -1.442695, %v1052_v21 }
0x1198   :  { %1497 = vpow2.f32 %v1282_v25 }
0x1199   :  { %1499 = vpow2.f32 %v1283_v26 }
0x11a0   :  { %v1494_v24 = vpop.eup %1493 }
0x11a1   :  { %v1496_v6 = vpop.eup %1495  ;;  %1062 = vrot.lane.b32.xlu0 %v1494_v24, %s1579_s4 }
0x11a2   :  { %1086 = vrot.lane.b32.xlu1 %v1496_v6, %s1579_s4  ;;  %v1498_v27 = vpop.eup %1497 }
0x11a3   :  { %v1500_v28 = vpop.eup %1499  ;;  %v1056_v29 = vadd.f32 1.0, %v1498_v27 }
0x11a4   :  { %v1080_v30 = vadd.f32 1.0, %v1500_v28 }
0x11a5   :  { %1501 = vrcp.f32 %v1056_v29 }
0x11a6   :  { %1503 = vrcp.f32 %v1080_v30 }
0x11af   :  { %v1502_v31 = vpop.eup %1501 }
0x11b0   :  { %v1504_v33 = vpop.eup %1503  ;;  %v1060_v37 = vmul.f32 %v1502_v31, %v959_v55 }
0x11b1   :  { %v1084_v38 = vmul.f32 %v1504_v33, %v983_v57 }
0x1213   :  { %v1063_v32 = vpop.permute.xlu0 %1062 }
0x1214   :  { %v1065_v34 = vmul.f32 %v1502_v31, %v1063_v32  ;;  %v1087_v35 = vpop.permute.xlu1 %1086 }
0x1215   :  { %v1089_v36 = vmul.f32 %v1504_v33, %v1087_v35 }
0x1216   :  { %1067 = vrot.lane.b32.xlu0 %v1065_v34, %s1579_s4 }
0x1217   :  { %1091 = vrot.lane.b32.xlu1 %v1089_v36, %s1579_s4 }
0x1288   :  { %v1068_v4 = vpop.permute.xlu0 %1067 }
0x1289   :  { %v1070_v39 = vadd.f32 %v1068_v4, %v1060_v37  ;;  %v1092_v7 = vpop.permute.xlu1 %1091 }
0x128a   :  { %v1094_v40 = vadd.f32 %v1092_v7, %v1084_v38 }
0x128b   :  { %1505 = vtanh.f32 %v1070_v39 }
0x128c   :  { %1507 = vtanh.f32 %v1094_v40 }
0x1295   :  { %v1506_v16 = vpop.eup %1505 }
0x1296   :  { %v1508_v41 = vpop.eup %1507  ;;  %1073 = vrot.lane.b32.xlu0 %v1506_v16, %s1579_s4 }
0x1297   :  { %1097 = vrot.lane.b32.xlu1 %v1508_v41, %s1579_s4 }
0x1308   :  { %v1074_v8 = vpop.permute.xlu0 %1073 }
0x1309   :  { %v1076_v10 = vmul.f32 %v1502_v31, %v1074_v8  ;;  %v1098_v11 = vpop.permute.xlu1 %1097 }
0x130a   :  { %v1100_v13 = vmul.f32 %v1504_v33, %v1098_v11 }
0x130b   :  { %1102 = vrot.lane.b32.xlu0 %v1076_v10, %s1580_s5 }
0x130c   :  { %1106 = vrot.lane.b32.xlu1 %v1100_v13, %s1581_s27 }
0x137d   :  { %v1103_v14 = vpop.permute.xlu0 %1102 }
0x137e   :  { %v1107_v15 = vpop.permute.xlu1 %1106 }
0x137f   :  { %v1109_v43 = vsel %vm90_vm0, %v1103_v14, %v1107_v15 }
0x1380   :  { %v1110_v44 = vmax.f32 %v999_v3, %v1109_v43  ;;  %v1111_v45 = vpack.c.bf16 %v1109_v43, %v1109_v43 }
0x1382   :  { %1284 = vmatmul.mubr.msk.bf16.vlgmr.msra.gmra.mrb[20].mxu1 %vm336_vm1, %v1111_v45 }
0x1455   :  { %v1149_v47 = vpop.f32.mrb[20].mxu1 }
0x1456   :  { %v1159_v49 = vadd.f32 %v1158_v46, %v1149_v47  ;;  %v1151_v50 = vpop.f32.mrb[21].mxu1 }
0x1457   :  { %v1162_v51 = vadd.f32 %v1161_v48, %v1151_v50  ;;  %v1153_v52 = vpop.f32.mrb[22].mxu1 }
0x1458   :  { %1509 = vtanh.f32 %v1159_v49  ;;  %v1154_v53 = vpop.f32.mrb[23].mxu1  ;;  %v1285_v56 = vmul.f32 -1.442695, %v1159_v49 }
0x1459   :  { %1511 = vtanh.f32 %v1162_v51  ;;  %v1286_v57 = vmul.f32 -1.442695, %v1162_v51 }
0x145a   :  { %1513 = vpow2.f32 %v1285_v56 }
0x145b   :  { %1515 = vpow2.f32 %v1286_v57 }
0x1462   :  { %v1510_v54 = vpop.eup %1509 }
0x1463   :  { %v1512_v55 = vpop.eup %1511  ;;  %1172 = vrot.lane.b32.xlu0 %v1510_v54, %s1579_s4 }
0x1464   :  { %1196 = vrot.lane.b32.xlu1 %v1512_v55, %s1579_s4  ;;  %v1514_v58 = vpop.eup %1513 }
0x1465   :  { %v1516_v59 = vpop.eup %1515  ;;  %v1166_v60 = vadd.f32 1.0, %v1514_v58 }
0x1466   :  { %v1190_v61 = vadd.f32 1.0, %v1516_v59 }
0x1467   :  { %1517 = vrcp.f32 %v1166_v60 }
0x1468   :  { %1519 = vrcp.f32 %v1190_v61 }
0x1471   :  { %v1518_v62 = vpop.eup %1517 }
0x1472   :  { %v1520_v0 = vpop.eup %1519  ;;  %v1170_v5 = vmul.f32 %v1518_v62, %v1070_v39 }
0x1473   :  { %v1194_v9 = vmul.f32 %v1520_v0, %v1094_v40 }
0x14d5   :  { %v1173_v63 = vpop.permute.xlu0 %1172 }
0x14d6   :  { %v1175_v1 = vmul.f32 %v1518_v62, %v1173_v63  ;;  %v1197_v2 = vpop.permute.xlu1 %1196 }
0x14d7   :  { %v1199_v3 = vmul.f32 %v1520_v0, %v1197_v2 }
0x14d8   :  { %1177 = vrot.lane.b32.xlu0 %v1175_v1, %s1579_s4 }
0x14d9   :  { %1201 = vrot.lane.b32.xlu1 %v1199_v3, %s1579_s4 }
0x154a   :  { %v1178_v42 = vpop.permute.xlu0 %1177 }
0x154b   :  { %v1180_v12 = vadd.f32 %v1178_v42, %v1170_v5  ;;  %v1202_v17 = vpop.permute.xlu1 %1201 }
0x154c   :  { %v1204_v18 = vadd.f32 %v1202_v17, %v1194_v9 }
0x154d   :  { %1521 = vtanh.f32 %v1180_v12 }
0x154e   :  { %1523 = vtanh.f32 %v1204_v18 }
0x1557   :  { %v1522_v19 = vpop.eup %1521 }
0x1558   :  { %v1524_v20 = vpop.eup %1523  ;;  %1183 = vrot.lane.b32.xlu0 %v1522_v19, %s1579_s4 }
0x1559   :  { %1207 = vrot.lane.b32.xlu1 %v1524_v20, %s1579_s4 }
0x15ca   :  { %v1184_v21 = vpop.permute.xlu0 %1183 }
0x15cb   :  { %v1186_v22 = vmul.f32 %v1518_v62, %v1184_v21  ;;  %v1208_v23 = vpop.permute.xlu1 %1207 }
0x15cc   :  { %v1210_v24 = vmul.f32 %v1520_v0, %v1208_v23 }
0x15cd   :  { %1212 = vrot.lane.b32.xlu0 %v1186_v22, %s1580_s5 }
0x15ce   :  { %1216 = vrot.lane.b32.xlu1 %v1210_v24, %s1581_s27 }
0x163f   :  { %v1213_v6 = vpop.permute.xlu0 %1212 }
0x1640   :  { %v1217_v25 = vpop.permute.xlu1 %1216 }
0x1641   :  { %v1219_v26 = vsel %vm90_vm0, %v1213_v6, %v1217_v25 }
0x1642   :  { %v1220_v27 = vmax.f32 %v1110_v44, %v1219_v26 }
0x1644   :  { %1525 = vtanh.f32 %v1220_v27 }
0x164e   :  { %v1526_v28 = vpop.eup %1525 }
0x164f   :  { %1222 = vst.msk [vmem:[#allocation7] sm:$0xff] %vm336_vm1, %v1526_v28 }
0x1650   :  { %1560 = shalt.err (!%p1557_p12)
}
0x1651   :  { %s1561_s9 = scalar_lea.hbm %s1939_s6, 128 }
0x1652   :  { %p1562_p13 = scmp.ne.s32.totalorder %s1939_s6, %s1561_s9  ;;  %p1565_p0 = scmp.lt.u32.totalorder %s1561_s9, %s1939_s6 }
0x1654   :  { %p1567_p1 = pnand %p1565_p0, %p1562_p13 }
0x1656   :  { %1570 = shalt.err (!%p1567_p1)
}
0x1657   :  { %1232 = dma.vmem_to_hbm [thread:$0]  %s1230_s29, 128, %s1939_s6, [#allocation6]  }
0x1658   :  { %1573 = dma.done.wait [#allocation6], 128  }
0x1659   :  { %1574 = vsyncadd [#allocation6], 4294967168 }
0x165a   :  { %1236 = vsyncpa [#allocation5], 1 }
0x165b   :  { %1237 = vsyncpa [#allocation6], 1 }

</bundles_post_ra>
